<compile_context>
chip_gen: v5e
topology: v5e:2x2
jax: 0.10.0
libtpu: 0.0.40
codegen_flags: <defaults>
</compile_context>

<pallas_src>
import functools
import math

import jax
import jax.numpy as jnp
from jax.experimental import pallas as pl
from jax.experimental.pallas import tpu as pltpu

LN_EPS = 1e-5
COMPUTE_DTYPE = jnp.bfloat16          # MXU operand dtype (fp32 accumulation)


def _round_up(x, m):
    return ((x + m - 1) // m) * m


def _choose_tile(dim, target, align):
    """Largest multiple of `align` <= target that divides `dim`; else full dim."""
    if dim <= target:
        return dim
    t = (min(target, dim) // align) * align
    while t >= align:
        if dim % t == 0:
            return t
        t -= align
    return dim


@functools.lru_cache(maxsize=None)
def _hw_defaults():
    """Generation-specific tile targets and scoped-VMEM limit."""
    vmem_bytes = 64 * 1024 * 1024
    try:
        info = pltpu.get_tpu_info()
        vmem_bytes = int(getattr(info, "vmem_capacity_bytes", vmem_bytes))
    except Exception:
        pass
    if vmem_bytes >= 100 * 1024 * 1024:
        # v5e / v6e: 128 MiB physical VMEM -> big tiles, ~100 MiB scoped limit.
        return {"tile_m": 512, "tile_n": 512, "tile_k": 1024,
                "full_k_max": 8192, "tile_q": 256,
                "vmem_limit": 100 * 1024 * 1024}
    # v7x (64 MiB physical VMEM) or unknown: conservative sizing.
    return {"tile_m": 256, "tile_n": 256, "tile_k": 512,
            "full_k_max": 4096, "tile_q": 256,
            "vmem_limit": 48 * 1024 * 1024}


# ----------------------- fused LayerNorm + Linear (+act) ---------------------
def _ln_linear_kernel(x_ref, g_ref, bln_ref, w_ref, b_ref, o_ref, xn_ref, *,
                      activation):
    # LayerNorm (fp32 stats) computed once per row tile (j == 0), cached in
    # VMEM scratch in the MXU compute dtype and reused for every output tile.
    @pl.when(pl.program_id(1) == 0)
    def _():
        xf = x_ref[...].astype(jnp.float32)
        mu = jnp.mean(xf, axis=-1, keepdims=True)
        var = jnp.mean(jnp.square(xf - mu), axis=-1, keepdims=True)
        y = (xf - mu) * jax.lax.rsqrt(var + LN_EPS)
        y = y * g_ref[...] + bln_ref[...]
        xn_ref[...] = y.astype(xn_ref.dtype)

    acc = jnp.dot(xn_ref[...], w_ref[...], preferred_element_type=jnp.float32)
    acc = acc + b_ref[...]
    if activation == "quick_gelu":
        acc = acc * jax.nn.sigmoid(1.702 * acc)
    o_ref[...] = acc.astype(o_ref.dtype)


def ln_linear(x2d, ln_w, ln_b, w, b, activation=None, out_dtype=None):
    """out = act(LayerNorm(x2d) @ w + b), LN fused into the matmul kernel.

    x2d: (M, K) fp32 ; ln_w/ln_b: (1, K) fp32 ; w: (K, N) bf16 ; b: (1, N) fp32
    K (the model width) stays un-tiled so the LN statistics are exact.
    """
    M, K = x2d.shape
    N = w.shape[1]
    out_dtype = out_dtype or x2d.dtype
    hw = _hw_defaults()
    tm = _choose_tile(M, hw["tile_m"], 8)
    tn = _choose_tile(N, hw["tile_n"], 128)
    grid = (M // tm, N // tn)
    kernel = functools.partial(_ln_linear_kernel, activation=activation)
    # TODO(synk): on v7x, reclaim the fp32 x-tile's second pipeline buffer
    #   (its index_map is constant in j and it is only read at j == 0), e.g.
    #   via pipeline_mode=pl.Buffered(1) or a separate LN-only i-grid pass.
    return pl.pallas_call(
        kernel,
        out_shape=jax.ShapeDtypeStruct((M, N), out_dtype),
        grid_spec=pltpu.PrefetchScalarGridSpec(
            num_scalar_prefetch=0,
            grid=grid,
            in_specs=[
                pl.BlockSpec((tm, K), lambda i, j: (i, 0)),
                pl.BlockSpec((1, K), lambda i, j: (0, 0)),
                pl.BlockSpec((1, K), lambda i, j: (0, 0)),
                pl.BlockSpec((K, tn), lambda i, j: (0, j)),
                pl.BlockSpec((1, tn), lambda i, j: (0, j)),
            ],
            out_specs=pl.BlockSpec((tm, tn), lambda i, j: (i, j)),
            scratch_shapes=[pltpu.VMEM((tm, K), COMPUTE_DTYPE)],
        ),
        compiler_params=pltpu.CompilerParams(
            dimension_semantics=("parallel", "arbitrary"),
            vmem_limit_bytes=hw["vmem_limit"],
        ),
    )(x2d, ln_w, ln_b, w, b)


# --------------------- tiled Linear + bias + residual add --------------------
def _linear_res_fullk_kernel(x_ref, w_ref, b_ref, r_ref, o_ref):
    # Full contraction depth in one MXU pass: no acc scratch, no init/finalize.
    acc = jnp.dot(x_ref[...].astype(w_ref.dtype), w_ref[...],
                  preferred_element_type=jnp.float32)
    o_ref[...] = (acc + b_ref[...] + r_ref[...].astype(jnp.float32)
                  ).astype(o_ref.dtype)


def _linear_res_ktiled_kernel(x_ref, w_ref, b_ref, r_ref, o_ref, acc_ref):
    @pl.when(pl.program_id(2) == 0)
    def _():
        acc_ref[...] = jnp.zeros_like(acc_ref)

    acc_ref[...] += jnp.dot(x_ref[...].astype(w_ref.dtype), w_ref[...],
                            preferred_element_type=jnp.float32)

    @pl.when(pl.program_id(2) == pl.num_programs(2) - 1)
    def _():
        o_ref[...] = (acc_ref[...] + b_ref[...]
                      + r_ref[...].astype(jnp.float32)).astype(o_ref.dtype)


def linear_residual(x2d, w, b, res2d):
    """out = x2d @ w + b + res2d  (fp32 accumulation and residual add)."""
    M, K = x2d.shape
    N = w.shape[1]
    hw = _hw_defaults()
    tm = _choose_tile(M, hw["tile_m"], 8)
    tn = _choose_tile(N, hw["tile_n"], 128)

    if K <= hw["full_k_max"]:
        # Reduction axis eliminated: one full-depth dot per (i, j) block.
        grid = (M // tm, N // tn)
        return pl.pallas_call(
            _linear_res_fullk_kernel,
            out_shape=jax.ShapeDtypeStruct((M, N), res2d.dtype),
            grid_spec=pltpu.PrefetchScalarGridSpec(
                num_scalar_prefetch=0,
                grid=grid,
                in_specs=[
                    pl.BlockSpec((tm, K), lambda i, j: (i, 0)),
                    pl.BlockSpec((K, tn), lambda i, j: (0, j)),
                    pl.BlockSpec((1, tn), lambda i, j: (0, j)),
                    pl.BlockSpec((tm, tn), lambda i, j: (i, j)),
                ],
                out_specs=pl.BlockSpec((tm, tn), lambda i, j: (i, j)),
            ),
            input_output_aliases={3: 0},        # reuse the residual buffer
            compiler_params=pltpu.CompilerParams(
                dimension_semantics=("parallel", "parallel"),
                vmem_limit_bytes=hw["vmem_limit"],
            ),
        )(x2d, w, b, res2d)

    # Very wide K: fall back to a K-tiled reduction (fp32 VMEM accumulator).
    tk = _choose_tile(K, hw["tile_k"], 128)
    grid = (M // tm, N // tn, K // tk)
    return pl.pallas_call(
        _linear_res_ktiled_kernel,
        out_shape=jax.ShapeDtypeStruct((M, N), res2d.dtype),
        grid_spec=pltpu.PrefetchScalarGridSpec(
            num_scalar_prefetch=0,
            grid=grid,
            in_specs=[
                pl.BlockSpec((tm, tk), lambda i, j, k: (i, k)),
                pl.BlockSpec((tk, tn), lambda i, j, k: (k, j)),
                pl.BlockSpec((1, tn), lambda i, j, k: (0, j)),
                pl.BlockSpec((tm, tn), lambda i, j, k: (i, j)),
            ],
            out_specs=pl.BlockSpec((tm, tn), lambda i, j, k: (i, j)),
            scratch_shapes=[pltpu.VMEM((tm, tn), jnp.float32)],
        ),
        input_output_aliases={3: 0},
        compiler_params=pltpu.CompilerParams(
            dimension_semantics=("parallel", "parallel", "arbitrary"),
            vmem_limit_bytes=hw["vmem_limit"],
        ),
    )(x2d, w, b, res2d)


# --------------------------- multi-head attention ----------------------------
def _attention_kernel(q_ref, k_ref, v_ref, m_ref, *out_refs, n_head,
                      with_weights):
    o_ref = out_refs[0]
    a_ref = out_refs[1] if with_weights else None

    Dh = q_ref.shape[-1]
    tq = q_ref.shape[-2]
    Lk = k_ref.shape[-2]
    scale = 1.0 / math.sqrt(Dh)

    # Hoist the key-padding mask broadcast out of the head loop (no CSE in JAX).
    mask_b = jnp.broadcast_to(m_ref[0].astype(jnp.float32), (tq, Lk))

    head_outs = []
    for h in range(n_head):                    # static unroll over heads
        qh = q_ref[0, h]                       # (tq, Dh) — leading-axis index,
        kh = k_ref[0, h]                       # (Lk, Dh)   no lane slicing
        vh = v_ref[0, h]                       # (Lk, Dh)

        s = jax.lax.dot_general(qh, kh, (((1,), (1,)), ((), ())),
                                preferred_element_type=jnp.float32)  # (tq, Lk)
        s = s * scale + mask_b
        s_max = jnp.max(s, axis=-1, keepdims=True)
        p = jnp.exp(s - s_max)
        denom = jnp.sum(p, axis=-1, keepdims=True)
        if with_weights:
            p = p / denom                      # exact normalization for returned weights
            a_ref[0, h] = p
        else:
            p = p * pl.reciprocal(denom, approx=True)

        oh = jnp.dot(p.astype(v_ref.dtype), vh,
                     preferred_element_type=jnp.float32)             # (tq, Dh)
        head_outs.append(oh)

    # Single lane-dense, full-width store of all heads (no masked vst.msk).
    o_ref[0] = jnp.concatenate(head_outs, axis=-1).astype(o_ref.dtype)


def mha_attention(qkv, add_mask, n_head, width, with_weights):
    """qkv: (B, L, 3E) compute dtype; add_mask: (B, 1, L) fp32 (0 or -1e30).

    Heads are split in the wrapper to (B, H, L, Dh) so the kernel indexes them
    along a leading axis; the grid is (batch, q-row tiles), both parallel, and
    the output is written as a lane-dense (tq, E) block per step.
    """
    B, L, _ = qkv.shape
    E = width
    Dh = E // n_head
    hw = _hw_defaults()
    tq = _choose_tile(L, hw["tile_q"], 8)

    # Wrapper-side layout plumbing: (B, L, 3, H, Dh) -> (3, B, H, L, Dh).
    qkv5 = qkv.reshape(B, L, 3, n_head, Dh).transpose(2, 0, 3, 1, 4)
    q, k, v = qkv5[0], qkv5[1], qkv5[2]        # each (B, H, L, Dh)

    kernel = functools.partial(_attention_kernel, n_head=n_head,
                               with_weights=with_weights)
    out_shapes = [jax.ShapeDtypeStruct((B, L, E), COMPUTE_DTYPE)]
    out_specs = [pl.BlockSpec((1, tq, E), lambda b, qi: (b, qi, 0))]
    if with_weights:
        out_shapes.append(jax.ShapeDtypeStruct((B, n_head, L, L), jnp.float32))
        out_specs.append(pl.BlockSpec((1, n_head, tq, L),
                                      lambda b, qi: (b, 0, qi, 0)))

    res = pl.pallas_call(
        kernel,
        grid=(B, L // tq),
        out_shape=tuple(out_shapes),
        in_specs=[
            pl.BlockSpec((1, n_head, tq, Dh), lambda b, qi: (b, 0, qi, 0)),
            pl.BlockSpec((1, n_head, L, Dh), lambda b, qi: (b, 0, 0, 0)),
            pl.BlockSpec((1, n_head, L, Dh), lambda b, qi: (b, 0, 0, 0)),
            pl.BlockSpec((1, 1, L), lambda b, qi: (b, 0, 0)),
        ],
        out_specs=tuple(out_specs),
        compiler_params=pltpu.CompilerParams(
            dimension_semantics=("parallel", "parallel"),
            vmem_limit_bytes=hw["vmem_limit"],
        ),
    )(q, k, v, add_mask)
    if with_weights:
        return res[0], res[1]
    return res[0], None


# ------------------------ ResidualAttentionBlock forward ---------------------
def residual_attention_block(x2, p, add_mask, n_head, N, L, need_weights):
    E = x2.shape[-1]

    # --- attention branch: x = x + out_proj(MHA(LN1(x))) ---
    qkv = ln_linear(x2, p["ln1_w"], p["ln1_b"], p["w_in"], p["b_in"],
                    out_dtype=COMPUTE_DTYPE)                  # (N*L, 3E) bf16
    qkv = qkv.reshape(N, L, 3 * E)
    attn_out, attn_w = mha_attention(qkv, add_mask, n_head, E, need_weights)
    attn_out = attn_out.reshape(N * L, E)
    x2 = linear_residual(attn_out, p["w_out"], p["b_out"], x2)

    # --- MLP branch: x = x + c_proj(QuickGELU(c_fc(LN2(x)))) ---
    h = ln_linear(x2, p["ln2_w"], p["ln2_b"], p["w_fc"], p["b_fc"],
                  activation="quick_gelu", out_dtype=COMPUTE_DTYPE)
    x2 = linear_residual(h, p["w_proj"], p["b_proj"], x2)
    return x2, attn_w


# ------------------------------- Transformer ---------------------------------
def transformer_forward(x, params, heads, x_mask=None, return_attention=False):
    L, N, E = x.shape
    # Pad L to a sublane multiple so N*L keeps good tile divisors; padded keys
    # are masked out and padded rows are sliced off before returning.
    L_pad = _round_up(L, 8)
    if L_pad != L:
        x = jnp.pad(x, ((0, L_pad - L), (0, 0), (0, 0)))

    # Additive key-padding mask, large finite negative instead of -inf:
    # fully-masked rows stay NaN-free (intentional divergence from PyTorch,
    # which produces NaN for fully-masked queries).
    if x_mask is None and L_pad == L:
        add_mask = jnp.zeros((N, 1, L_pad), jnp.float32)
    else:
        key_pad = jnp.zeros((N, L_pad), jnp.bool_)
        if x_mask is not None:
            key_pad = key_pad.at[:, :L].set(x_mask.astype(bool))
        if L_pad != L:
            key_pad = key_pad.at[:, L:].set(True)
        add_mask = jnp.where(key_pad, -1e30, 0.0).astype(jnp.float32)[:, None, :]

    # Single layout change: (L_pad, N, E) -> (N*L_pad, E) rows; reverted at exit.
    x2 = jnp.transpose(x, (1, 0, 2)).reshape(N * L_pad, E)

    att = None
    n_blocks = len(params)
    for idx, p in enumerate(params):          # len(params) == layers - 1
        need_w = return_attention and (idx == n_blocks - 1)
        x2, att_i = residual_attention_block(x2, p, add_mask, heads, N, L_pad,
                                             need_w)
        if need_w:
            att = att_i                        # (N, heads, L_pad, L_pad)

    out = x2.reshape(N, L_pad, E)[:, :L].transpose(1, 0, 2)
    if return_attention:
        att = att[:, :, :L, :L]
        return out, att
    return out


def init_transformer_params(key, width, layers, heads):
    """Parameters stored in kernel-ready layout (hoisted reshapes / casts):
    weights (in, out) in bf16; biases / LN params as (1, dim) fp32.
    NOTE: PyTorch stores Linear weights as (out, in) and applies x @ W^T;
    loading a real checkpoint requires transposing into this (in, out) layout."""
    del heads  # head split happens at runtime
    params = []
    for _ in range(layers - 1):               # matches range(layers - 1) in __init__
        key, k0, k1, k2, k3 = jax.random.split(key, 5)
        params.append({
            "ln1_w": jnp.ones((1, width), jnp.float32),
            "ln1_b": jnp.zeros((1, width), jnp.float32),
            "w_in": (jax.random.normal(k0, (width, 3 * width), jnp.float32)
                     * 0.02).astype(COMPUTE_DTYPE),
            "b_in": jnp.zeros((1, 3 * width), jnp.float32),
            "w_out": (jax.random.normal(k1, (width, width), jnp.float32)
                      * 0.02).astype(COMPUTE_DTYPE),
            "b_out": jnp.zeros((1, width), jnp.float32),
            "ln2_w": jnp.ones((1, width), jnp.float32),
            "ln2_b": jnp.zeros((1, width), jnp.float32),
            "w_fc": (jax.random.normal(k2, (width, 4 * width), jnp.float32)
                     * 0.02).astype(COMPUTE_DTYPE),
            "b_fc": jnp.zeros((1, 4 * width), jnp.float32),
            "w_proj": (jax.random.normal(k3, (4 * width, width), jnp.float32)
                       * 0.02).astype(COMPUTE_DTYPE),
            "b_proj": jnp.zeros((1, width), jnp.float32),
        })
    return params


if __name__ == "__main__":
    # Small shapes consistent with the module: width=32, heads=4, layers=3 (-> 2 blocks)
    width, layers, heads = 32, 3, 4
    L, N = 8, 2                                # seq_len, batch

    key = jax.random.PRNGKey(0)
    key, kx = jax.random.split(key)
    x = jax.random.normal(kx, (L, N, width), jnp.float32)

    # key_padding_mask: True == padded key; last 2 keys of batch 1 are padded
    x_mask = jnp.zeros((N, L), jnp.bool_).at[1, L - 2:].set(True)

    params = init_transformer_params(key, width, layers, heads)

    fwd = jax.jit(transformer_forward,
                  static_argnames=("heads", "return_attention"))

    # Run without mask (no attention weights materialized anywhere)
    out = fwd(x, params, heads=heads, x_mask=None, return_attention=False)
    out = jax.block_until_ready(out)
    assert out.shape == (L, N, width)
    assert bool(jnp.isfinite(out).all())

    # Run with mask and per-head attention weights of the last block
    # (reference module uses need_weights=True, average_attn_weights=False
    #  -> per-head (N, heads, L, L) weights)
    out_m, att = fwd(x, params, heads=heads, x_mask=x_mask,
                     return_attention=True)
    out_m = jax.block_until_ready(out_m)
    att = jax.block_until_ready(att)
    assert out_m.shape == (L, N, width)
    assert att.shape == (N, heads, L, L)
    assert bool(jnp.isfinite(out_m).all())
    assert bool(jnp.isfinite(att).all())

    print("KERNEL_OK")
</pallas_src>

<mosaic_0001>
module attributes {stable_mosaic.version = 11 : i64} {
  func.func @_ln_linear_kernel(%arg0: i32, %arg1: i32, %arg2: memref<16x32xf32, #tpu.memory_space<vmem>>, %arg3: memref<1x32xf32, #tpu.memory_space<vmem>>, %arg4: memref<1x32xf32, #tpu.memory_space<vmem>>, %arg5: memref<32x96xbf16, #tpu.memory_space<vmem>>, %arg6: memref<1x96xf32, #tpu.memory_space<vmem>>, %arg7: memref<16x96xbf16, #tpu.memory_space<vmem>>, %arg8: memref<16x32xbf16, #tpu.memory_space<vmem>>) attributes {dimension_semantics = [#tpu.dimension_semantics<parallel>, #tpu.dimension_semantics<arbitrary>], iteration_bounds = array<i64: 1, 1>, scalar_prefetch = 0 : i64, scratch_operands = 1 : i64, tpu.core_type = #tpu.core_type<tc>, window_params = [{transform_indices = @transform_0, window_bounds = array<i64: 16, 32>}, {pipeline_mode = #tpu.pipeline_mode<synchronous>, transform_indices = @transform_1, window_bounds = array<i64: 1, 32>}, {pipeline_mode = #tpu.pipeline_mode<synchronous>, transform_indices = @transform_2, window_bounds = array<i64: 1, 32>}, {transform_indices = @transform_3, window_bounds = array<i64: 32, 96>}, {transform_indices = @transform_4, window_bounds = array<i64: 1, 96>}, {transform_indices = @transform_5, window_bounds = array<i64: 16, 96>}]} {
    %c0_i32 = arith.constant 0 : i32
    %0 = arith.cmpi eq, %arg1, %c0_i32 : i32
    %1 = arith.extui %0 : i1 to i32
    %c0_i32_0 = arith.constant 0 : i32
    %2 = arith.cmpi ne, %1, %c0_i32_0 : i32
    scf.if %2 {
      %c0_8 = arith.constant 0 : index
      %c0_9 = arith.constant 0 : index
      %11 = vector.load %arg2[%c0_8, %c0_9] : memref<16x32xf32, #tpu.memory_space<vmem>>, vector<16x32xf32>
      %cst_10 = arith.constant dense<0.000000e+00> : vector<16xf32>
      %12 = vector.multi_reduction <add>, %11, %cst_10 [1] : vector<16x32xf32> to vector<16xf32>
      %13 = vector.shape_cast %12 : vector<16xf32> to vector<16x1xf32>
      %cst_11 = arith.constant 3.200000e+01 : f32
      %14 = vector.broadcast %cst_11 : f32 to vector<16x1xf32>
      %15 = arith.divf %13, %14 : vector<16x1xf32>
      %16 = vector.broadcast %15 : vector<16x1xf32> to vector<16x32xf32>
      %17 = arith.subf %11, %16 : vector<16x32xf32>
      %18 = arith.mulf %17, %17 : vector<16x32xf32>
      %cst_12 = arith.constant dense<0.000000e+00> : vector<16xf32>
      %19 = vector.multi_reduction <add>, %18, %cst_12 [1] : vector<16x32xf32> to vector<16xf32>
      %20 = vector.shape_cast %19 : vector<16xf32> to vector<16x1xf32>
      %cst_13 = arith.constant 3.200000e+01 : f32
      %21 = vector.broadcast %cst_13 : f32 to vector<16x1xf32>
      %22 = arith.divf %20, %21 : vector<16x1xf32>
      %23 = vector.broadcast %15 : vector<16x1xf32> to vector<16x32xf32>
      %24 = arith.subf %11, %23 : vector<16x32xf32>
      %cst_14 = arith.constant 9.99999974E-6 : f32
      %25 = vector.broadcast %cst_14 : f32 to vector<16x1xf32>
      %26 = arith.addf %22, %25 : vector<16x1xf32>
      %27 = math.rsqrt %26 : vector<16x1xf32>
      %28 = vector.broadcast %27 : vector<16x1xf32> to vector<16x32xf32>
      %29 = arith.mulf %24, %28 : vector<16x32xf32>
      %c0_15 = arith.constant 0 : index
      %c0_16 = arith.constant 0 : index
      %30 = vector.load %arg3[%c0_15, %c0_16] : memref<1x32xf32, #tpu.memory_space<vmem>>, vector<1x32xf32>
      %31 = vector.broadcast %30 : vector<1x32xf32> to vector<16x32xf32>
      %32 = arith.mulf %29, %31 : vector<16x32xf32>
      %c0_17 = arith.constant 0 : index
      %c0_18 = arith.constant 0 : index
      %33 = vector.load %arg4[%c0_17, %c0_18] : memref<1x32xf32, #tpu.memory_space<vmem>>, vector<1x32xf32>
      %34 = vector.broadcast %33 : vector<1x32xf32> to vector<16x32xf32>
      %35 = arith.addf %32, %34 : vector<16x32xf32>
      %36 = arith.truncf %35 : vector<16x32xf32> to vector<16x32xbf16>
      %c0_19 = arith.constant 0 : index
      %c0_20 = arith.constant 0 : index
      %37 = vector.load %arg8[%c0_19, %c0_20] : memref<16x32xbf16, #tpu.memory_space<vmem>>, vector<16x32xbf16>
      tpu.vector_store %arg8[%c0_19, %c0_20], %36 {strides = array<i32>} : memref<16x32xbf16, #tpu.memory_space<vmem>>, vector<16x32xbf16>,
    } else {
    }
    %c0 = arith.constant 0 : index
    %c0_1 = arith.constant 0 : index
    %3 = vector.load %arg8[%c0, %c0_1] : memref<16x32xbf16, #tpu.memory_space<vmem>>, vector<16x32xbf16>
    %c0_2 = arith.constant 0 : index
    %c0_3 = arith.constant 0 : index
    %4 = vector.load %arg5[%c0_2, %c0_3] : memref<32x96xbf16, #tpu.memory_space<vmem>>, vector<32x96xbf16>
    %cst = arith.constant dense<0.000000e+00> : vector<16x96xf32>
    %5 = tpu.matmul %3, %4, %cst {dimension_numbers = #tpu.dot_dimension_numbers<[1], [0], [0], [1], [0, 0, 1, 1], [], []>} : vector<16x32xbf16>, vector<32x96xbf16>, vector<16x96xf32> -> vector<16x96xf32>
    %c0_4 = arith.constant 0 : index
    %c0_5 = arith.constant 0 : index
    %6 = vector.load %arg6[%c0_4, %c0_5] : memref<1x96xf32, #tpu.memory_space<vmem>>, vector<1x96xf32>
    %7 = vector.broadcast %6 : vector<1x96xf32> to vector<16x96xf32>
    %8 = arith.addf %5, %7 : vector<16x96xf32>
    %9 = arith.truncf %8 : vector<16x96xf32> to vector<16x96xbf16>
    %c0_6 = arith.constant 0 : index
    %c0_7 = arith.constant 0 : index
    %10 = vector.load %arg7[%c0_6, %c0_7] : memref<16x96xbf16, #tpu.memory_space<vmem>>, vector<16x96xbf16>
    tpu.vector_store %arg7[%c0_6, %c0_7], %9 {strides = array<i32>} : memref<16x96xbf16, #tpu.memory_space<vmem>>, vector<16x96xbf16>,
    return
  }
  func.func @transform_0(%arg0: i32, %arg1: i32) -> (i32, i32) {
    %c0_i32 = arith.constant 0 : i32
    %c0_i32_0 = arith.constant 0 : i32
    return %arg0, %c0_i32 : i32, i32
  }
  func.func @transform_1(%arg0: i32, %arg1: i32) -> (i32, i32) {
    %c0_i32 = arith.constant 0 : i32
    %c0_i32_0 = arith.constant 0 : i32
    %c0_i32_1 = arith.constant 0 : i32
    return %c0_i32, %c0_i32_0 : i32, i32
  }
  func.func @transform_2(%arg0: i32, %arg1: i32) -> (i32, i32) {
    %c0_i32 = arith.constant 0 : i32
    %c0_i32_0 = arith.constant 0 : i32
    %c0_i32_1 = arith.constant 0 : i32
    return %c0_i32, %c0_i32_0 : i32, i32
  }
  func.func @transform_3(%arg0: i32, %arg1: i32) -> (i32, i32) {
    %c0_i32 = arith.constant 0 : i32
    %c0_i32_0 = arith.constant 0 : i32
    return %c0_i32, %arg1 : i32, i32
  }
  func.func @transform_4(%arg0: i32, %arg1: i32) -> (i32, i32) {
    %c0_i32 = arith.constant 0 : i32
    %c0_i32_0 = arith.constant 0 : i32
    return %c0_i32, %arg1 : i32, i32
  }
  func.func @transform_5(%arg0: i32, %arg1: i32) -> (i32, i32) {
    %c0_i32 = arith.constant 0 : i32
    return %arg0, %arg1 : i32, i32
  }
}

module attributes {stable_mosaic.version = 11 : i64} {
  func.func @_attention_kernel(%arg0: i32, %arg1: i32, %arg2: memref<1x4x8x8xbf16, #tpu.memory_space<vmem>>, %arg3: memref<1x4x8x8xbf16, #tpu.memory_space<vmem>>, %arg4: memref<1x4x8x8xbf16, #tpu.memory_space<vmem>>, %arg5: memref<1x1x8xf32, #tpu.memory_space<vmem>>, %arg6: memref<1x8x32xbf16, #tpu.memory_space<vmem>>) attributes {dimension_semantics = [#tpu.dimension_semantics<parallel>, #tpu.dimension_semantics<parallel>], iteration_bounds = array<i64: 2, 1>, scalar_prefetch = 0 : i64, scratch_operands = 0 : i64, tpu.core_type = #tpu.core_type<tc>, window_params = [{transform_indices = @transform_0, window_bounds = array<i64: 1, 4, 8, 8>}, {transform_indices = @transform_1, window_bounds = array<i64: 1, 4, 8, 8>}, {transform_indices = @transform_2, window_bounds = array<i64: 1, 4, 8, 8>}, {transform_indices = @transform_3, window_bounds = array<i64: 1, 1, 8>}, {transform_indices = @transform_4, window_bounds = array<i64: 1, 8, 32>}]} {
    %c0 = arith.constant 0 : index
    %c0_0 = arith.constant 0 : index
    %c0_1 = arith.constant 0 : index
    %0 = vector.load %arg5[%c0, %c0_0, %c0_1] : memref<1x1x8xf32, #tpu.memory_space<vmem>>, vector<1x1x8xf32>
    %1 = vector.shape_cast %0 : vector<1x1x8xf32> to vector<1x8xf32>
    %2 = vector.shape_cast %1 : vector<1x8xf32> to vector<1x8xf32>
    %3 = vector.broadcast %2 : vector<1x8xf32> to vector<8x8xf32>
    %c0_2 = arith.constant 0 : index
    %c0_3 = arith.constant 0 : index
    %c0_4 = arith.constant 0 : index
    %c0_5 = arith.constant 0 : index
    %4 = vector.load %arg2[%c0_2, %c0_3, %c0_4, %c0_5] : memref<1x4x8x8xbf16, #tpu.memory_space<vmem>>, vector<1x1x8x8xbf16>
    %5 = vector.shape_cast %4 : vector<1x1x8x8xbf16> to vector<8x8xbf16>
    %c0_6 = arith.constant 0 : index
    %c0_7 = arith.constant 0 : index
    %c0_8 = arith.constant 0 : index
    %c0_9 = arith.constant 0 : index
    %6 = vector.load %arg3[%c0_6, %c0_7, %c0_8, %c0_9] : memref<1x4x8x8xbf16, #tpu.memory_space<vmem>>, vector<1x1x8x8xbf16>
    %7 = vector.shape_cast %6 : vector<1x1x8x8xbf16> to vector<8x8xbf16>
    %c0_10 = arith.constant 0 : index
    %c0_11 = arith.constant 0 : index
    %c0_12 = arith.constant 0 : index
    %c0_13 = arith.constant 0 : index
    %8 = vector.load %arg4[%c0_10, %c0_11, %c0_12, %c0_13] : memref<1x4x8x8xbf16, #tpu.memory_space<vmem>>, vector<1x1x8x8xbf16>
    %9 = vector.shape_cast %8 : vector<1x1x8x8xbf16> to vector<8x8xbf16>
    %cst = arith.constant dense<0.000000e+00> : vector<8x8xf32>
    %10 = tpu.matmul %5, %7, %cst {dimension_numbers = #tpu.dot_dimension_numbers<[1], [1], [0], [0], [0, 0, 1, 0], [], []>} : vector<8x8xbf16>, vector<8x8xbf16>, vector<8x8xf32> -> vector<8x8xf32>
    %cst_14 = arith.constant 0.353553385 : f32
    %11 = vector.broadcast %cst_14 : f32 to vector<8x8xf32>
    %12 = arith.mulf %10, %11 : vector<8x8xf32>
    %13 = arith.addf %12, %3 : vector<8x8xf32>
    %cst_15 = arith.constant dense<0xFF800000> : vector<8xf32>
    %14 = vector.multi_reduction <maximumf>, %13, %cst_15 [1] : vector<8x8xf32> to vector<8xf32>
    %15 = vector.shape_cast %14 : vector<8xf32> to vector<8x1xf32>
    %16 = vector.broadcast %15 : vector<8x1xf32> to vector<8x8xf32>
    %17 = arith.subf %13, %16 : vector<8x8xf32>
    %18 = math.exp %17 : vector<8x8xf32>
    %cst_16 = arith.constant dense<0.000000e+00> : vector<8xf32>
    %19 = vector.multi_reduction <add>, %18, %cst_16 [1] : vector<8x8xf32> to vector<8xf32>
    %20 = vector.shape_cast %19 : vector<8xf32> to vector<8x1xf32>
    %21 = tpu.reciprocal %20 {approx = true} : vector<8x1xf32> -> vector<8x1xf32>
    %22 = vector.broadcast %21 : vector<8x1xf32> to vector<8x8xf32>
    %23 = arith.mulf %18, %22 : vector<8x8xf32>
    %24 = arith.truncf %23 : vector<8x8xf32> to vector<8x8xbf16>
    %cst_17 = arith.constant dense<0.000000e+00> : vector<8x8xf32>
    %25 = tpu.matmul %24, %9, %cst_17 {dimension_numbers = #tpu.dot_dimension_numbers<[1], [0], [0], [1], [0, 0, 1, 1], [], []>} : vector<8x8xbf16>, vector<8x8xbf16>, vector<8x8xf32> -> vector<8x8xf32>
    %c0_18 = arith.constant 0 : index
    %c1 = arith.constant 1 : index
    %c0_19 = arith.constant 0 : index
    %c0_20 = arith.constant 0 : index
    %26 = vector.load %arg2[%c0_18, %c1, %c0_19, %c0_20] : memref<1x4x8x8xbf16, #tpu.memory_space<vmem>>, vector<1x1x8x8xbf16>
    %27 = vector.shape_cast %26 : vector<1x1x8x8xbf16> to vector<8x8xbf16>
    %c0_21 = arith.constant 0 : index
    %c1_22 = arith.constant 1 : index
    %c0_23 = arith.constant 0 : index
    %c0_24 = arith.constant 0 : index
    %28 = vector.load %arg3[%c0_21, %c1_22, %c0_23, %c0_24] : memref<1x4x8x8xbf16, #tpu.memory_space<vmem>>, vector<1x1x8x8xbf16>
    %29 = vector.shape_cast %28 : vector<1x1x8x8xbf16> to vector<8x8xbf16>
    %c0_25 = arith.constant 0 : index
    %c1_26 = arith.constant 1 : index
    %c0_27 = arith.constant 0 : index
    %c0_28 = arith.constant 0 : index
    %30 = vector.load %arg4[%c0_25, %c1_26, %c0_27, %c0_28] : memref<1x4x8x8xbf16, #tpu.memory_space<vmem>>, vector<1x1x8x8xbf16>
    %31 = vector.shape_cast %30 : vector<1x1x8x8xbf16> to vector<8x8xbf16>
    %cst_29 = arith.constant dense<0.000000e+00> : vector<8x8xf32>
    %32 = tpu.matmul %27, %29, %cst_29 {dimension_numbers = #tpu.dot_dimension_numbers<[1], [1], [0], [0], [0, 0, 1, 0], [], []>} : vector<8x8xbf16>, vector<8x8xbf16>, vector<8x8xf32> -> vector<8x8xf32>
    %cst_30 = arith.constant 0.353553385 : f32
    %33 = vector.broadcast %cst_30 : f32 to vector<8x8xf32>
    %34 = arith.mulf %32, %33 : vector<8x8xf32>
    %35 = arith.addf %34, %3 : vector<8x8xf32>
    %cst_31 = arith.constant dense<0xFF800000> : vector<8xf32>
    %36 = vector.multi_reduction <maximumf>, %35, %cst_31 [1] : vector<8x8xf32> to vector<8xf32>
    %37 = vector.shape_cast %36 : vector<8xf32> to vector<8x1xf32>
    %38 = vector.broadcast %37 : vector<8x1xf32> to vector<8x8xf32>
    %39 = arith.subf %35, %38 : vector<8x8xf32>
    %40 = math.exp %39 : vector<8x8xf32>
    %cst_32 = arith.constant dense<0.000000e+00> : vector<8xf32>
    %41 = vector.multi_reduction <add>, %40, %cst_32 [1] : vector<8x8xf32> to vector<8xf32>
    %42 = vector.shape_cast %41 : vector<8xf32> to vector<8x1xf32>
    %43 = tpu.reciprocal %42 {approx = true} : vector<8x1xf32> -> vector<8x1xf32>
    %44 = vector.broadcast %43 : vector<8x1xf32> to vector<8x8xf32>
    %45 = arith.mulf %40, %44 : vector<8x8xf32>
    %46 = arith.truncf %45 : vector<8x8xf32> to vector<8x8xbf16>
    %cst_33 = arith.constant dense<0.000000e+00> : vector<8x8xf32>
    %47 = tpu.matmul %46, %31, %cst_33 {dimension_numbers = #tpu.dot_dimension_numbers<[1], [0], [0], [1], [0, 0, 1, 1], [], []>} : vector<8x8xbf16>, vector<8x8xbf16>, vector<8x8xf32> -> vector<8x8xf32>
    %c0_34 = arith.constant 0 : index
    %c2 = arith.constant 2 : index
    %c0_35 = arith.constant 0 : index
    %c0_36 = arith.constant 0 : index
    %48 = vector.load %arg2[%c0_34, %c2, %c0_35, %c0_36] : memref<1x4x8x8xbf16, #tpu.memory_space<vmem>>, vector<1x1x8x8xbf16>
    %49 = vector.shape_cast %48 : vector<1x1x8x8xbf16> to vector<8x8xbf16>
    %c0_37 = arith.constant 0 : index
    %c2_38 = arith.constant 2 : index
    %c0_39 = arith.constant 0 : index
    %c0_40 = arith.constant 0 : index
    %50 = vector.load %arg3[%c0_37, %c2_38, %c0_39, %c0_40] : memref<1x4x8x8xbf16, #tpu.memory_space<vmem>>, vector<1x1x8x8xbf16>
    %51 = vector.shape_cast %50 : vector<1x1x8x8xbf16> to vector<8x8xbf16>
    %c0_41 = arith.constant 0 : index
    %c2_42 = arith.constant 2 : index
    %c0_43 = arith.constant 0 : index
    %c0_44 = arith.constant 0 : index
    %52 = vector.load %arg4[%c0_41, %c2_42, %c0_43, %c0_44] : memref<1x4x8x8xbf16, #tpu.memory_space<vmem>>, vector<1x1x8x8xbf16>
    %53 = vector.shape_cast %52 : vector<1x1x8x8xbf16> to vector<8x8xbf16>
    %cst_45 = arith.constant dense<0.000000e+00> : vector<8x8xf32>
    %54 = tpu.matmul %49, %51, %cst_45 {dimension_numbers = #tpu.dot_dimension_numbers<[1], [1], [0], [0], [0, 0, 1, 0], [], []>} : vector<8x8xbf16>, vector<8x8xbf16>, vector<8x8xf32> -> vector<8x8xf32>
    %cst_46 = arith.constant 0.353553385 : f32
    %55 = vector.broadcast %cst_46 : f32 to vector<8x8xf32>
    %56 = arith.mulf %54, %55 : vector<8x8xf32>
    %57 = arith.addf %56, %3 : vector<8x8xf32>
    %cst_47 = arith.constant dense<0xFF800000> : vector<8xf32>
    %58 = vector.multi_reduction <maximumf>, %57, %cst_47 [1] : vector<8x8xf32> to vector<8xf32>
    %59 = vector.shape_cast %58 : vector<8xf32> to vector<8x1xf32>
    %60 = vector.broadcast %59 : vector<8x1xf32> to vector<8x8xf32>
    %61 = arith.subf %57, %60 : vector<8x8xf32>
    %62 = math.exp %61 : vector<8x8xf32>
    %cst_48 = arith.constant dense<0.000000e+00> : vector<8xf32>
    %63 = vector.multi_reduction <add>, %62, %cst_48 [1] : vector<8x8xf32> to vector<8xf32>
    %64 = vector.shape_cast %63 : vector<8xf32> to vector<8x1xf32>
    %65 = tpu.reciprocal %64 {approx = true} : vector<8x1xf32> -> vector<8x1xf32>
    %66 = vector.broadcast %65 : vector<8x1xf32> to vector<8x8xf32>
    %67 = arith.mulf %62, %66 : vector<8x8xf32>
    %68 = arith.truncf %67 : vector<8x8xf32> to vector<8x8xbf16>
    %cst_49 = arith.constant dense<0.000000e+00> : vector<8x8xf32>
    %69 = tpu.matmul %68, %53, %cst_49 {dimension_numbers = #tpu.dot_dimension_numbers<[1], [0], [0], [1], [0, 0, 1, 1], [], []>} : vector<8x8xbf16>, vector<8x8xbf16>, vector<8x8xf32> -> vector<8x8xf32>
    %c0_50 = arith.constant 0 : index
    %c3 = arith.constant 3 : index
    %c0_51 = arith.constant 0 : index
    %c0_52 = arith.constant 0 : index
    %70 = vector.load %arg2[%c0_50, %c3, %c0_51, %c0_52] : memref<1x4x8x8xbf16, #tpu.memory_space<vmem>>, vector<1x1x8x8xbf16>
    %71 = vector.shape_cast %70 : vector<1x1x8x8xbf16> to vector<8x8xbf16>
    %c0_53 = arith.constant 0 : index
    %c3_54 = arith.constant 3 : index
    %c0_55 = arith.constant 0 : index
    %c0_56 = arith.constant 0 : index
    %72 = vector.load %arg3[%c0_53, %c3_54, %c0_55, %c0_56] : memref<1x4x8x8xbf16, #tpu.memory_space<vmem>>, vector<1x1x8x8xbf16>
    %73 = vector.shape_cast %72 : vector<1x1x8x8xbf16> to vector<8x8xbf16>
    %c0_57 = arith.constant 0 : index
    %c3_58 = arith.constant 3 : index
    %c0_59 = arith.constant 0 : index
    %c0_60 = arith.constant 0 : index
    %74 = vector.load %arg4[%c0_57, %c3_58, %c0_59, %c0_60] : memref<1x4x8x8xbf16, #tpu.memory_space<vmem>>, vector<1x1x8x8xbf16>
    %75 = vector.shape_cast %74 : vector<1x1x8x8xbf16> to vector<8x8xbf16>
    %cst_61 = arith.constant dense<0.000000e+00> : vector<8x8xf32>
    %76 = tpu.matmul %71, %73, %cst_61 {dimension_numbers = #tpu.dot_dimension_numbers<[1], [1], [0], [0], [0, 0, 1, 0], [], []>} : vector<8x8xbf16>, vector<8x8xbf16>, vector<8x8xf32> -> vector<8x8xf32>
    %cst_62 = arith.constant 0.353553385 : f32
    %77 = vector.broadcast %cst_62 : f32 to vector<8x8xf32>
    %78 = arith.mulf %76, %77 : vector<8x8xf32>
    %79 = arith.addf %78, %3 : vector<8x8xf32>
    %cst_63 = arith.constant dense<0xFF800000> : vector<8xf32>
    %80 = vector.multi_reduction <maximumf>, %79, %cst_63 [1] : vector<8x8xf32> to vector<8xf32>
    %81 = vector.shape_cast %80 : vector<8xf32> to vector<8x1xf32>
    %82 = vector.broadcast %81 : vector<8x1xf32> to vector<8x8xf32>
    %83 = arith.subf %79, %82 : vector<8x8xf32>
    %84 = math.exp %83 : vector<8x8xf32>
    %cst_64 = arith.constant dense<0.000000e+00> : vector<8xf32>
    %85 = vector.multi_reduction <add>, %84, %cst_64 [1] : vector<8x8xf32> to vector<8xf32>
    %86 = vector.shape_cast %85 : vector<8xf32> to vector<8x1xf32>
    %87 = tpu.reciprocal %86 {approx = true} : vector<8x1xf32> -> vector<8x1xf32>
    %88 = vector.broadcast %87 : vector<8x1xf32> to vector<8x8xf32>
    %89 = arith.mulf %84, %88 : vector<8x8xf32>
    %90 = arith.truncf %89 : vector<8x8xf32> to vector<8x8xbf16>
    %cst_65 = arith.constant dense<0.000000e+00> : vector<8x8xf32>
    %91 = tpu.matmul %90, %75, %cst_65 {dimension_numbers = #tpu.dot_dimension_numbers<[1], [0], [0], [1], [0, 0, 1, 1], [], []>} : vector<8x8xbf16>, vector<8x8xbf16>, vector<8x8xf32> -> vector<8x8xf32>
    %92 = tpu.concatenate %25, %47, %69, %91 in 1 : vector<8x8xf32>, vector<8x8xf32>, vector<8x8xf32>, vector<8x8xf32> -> vector<8x32xf32>
    %93 = arith.truncf %92 : vector<8x32xf32> to vector<8x32xbf16>
    %c0_66 = arith.constant 0 : index
    %c0_67 = arith.constant 0 : index
    %c0_68 = arith.constant 0 : index
    %94 = vector.load %arg6[%c0_66, %c0_67, %c0_68] : memref<1x8x32xbf16, #tpu.memory_space<vmem>>, vector<1x8x32xbf16>
    %95 = vector.shape_cast %94 : vector<1x8x32xbf16> to vector<8x32xbf16>
    %96 = vector.shape_cast %93 : vector<8x32xbf16> to vector<1x8x32xbf16>
    tpu.vector_store %arg6[%c0_66, %c0_67, %c0_68], %96 {strides = array<i32>} : memref<1x8x32xbf16, #tpu.memory_space<vmem>>, vector<1x8x32xbf16>,
    return
  }
  func.func @transform_0(%arg0: i32, %arg1: i32) -> (i32, i32, i32, i32) {
    %c0_i32 = arith.constant 0 : i32
    %c0_i32_0 = arith.constant 0 : i32
    %c0_i32_1 = arith.constant 0 : i32
    return %arg0, %c0_i32, %arg1, %c0_i32_0 : i32, i32, i32, i32
  }
  func.func @transform_1(%arg0: i32, %arg1: i32) -> (i32, i32, i32, i32) {
    %c0_i32 = arith.constant 0 : i32
    %c0_i32_0 = arith.constant 0 : i32
    %c0_i32_1 = arith.constant 0 : i32
    %c0_i32_2 = arith.constant 0 : i32
    return %arg0, %c0_i32, %c0_i32_0, %c0_i32_1 : i32, i32, i32, i32
  }
  func.func @transform_2(%arg0: i32, %arg1: i32) -> (i32, i32, i32, i32) {
    %c0_i32 = arith.constant 0 : i32
    %c0_i32_0 = arith.constant 0 : i32
    %c0_i32_1 = arith.constant 0 : i32
    %c0_i32_2 = arith.constant 0 : i32
    return %arg0, %c0_i32, %c0_i32_0, %c0_i32_1 : i32, i32, i32, i32
  }
  func.func @transform_3(%arg0: i32, %arg1: i32) -> (i32, i32, i32) {
    %c0_i32 = arith.constant 0 : i32
    %c0_i32_0 = arith.constant 0 : i32
    %c0_i32_1 = arith.constant 0 : i32
    return %arg0, %c0_i32, %c0_i32_0 : i32, i32, i32
  }
  func.func @transform_4(%arg0: i32, %arg1: i32) -> (i32, i32, i32) {
    %c0_i32 = arith.constant 0 : i32
    %c0_i32_0 = arith.constant 0 : i32
    return %arg0, %arg1, %c0_i32 : i32, i32, i32
  }
}

module attributes {stable_mosaic.version = 11 : i64} {
  func.func @_linear_res_fullk_kernel(%arg0: i32, %arg1: i32, %arg2: memref<16x32xbf16, #tpu.memory_space<vmem>>, %arg3: memref<32x32xbf16, #tpu.memory_space<vmem>>, %arg4: memref<1x32xf32, #tpu.memory_space<vmem>>, %arg5: memref<16x32xf32, #tpu.memory_space<vmem>>, %arg6: memref<16x32xf32, #tpu.memory_space<vmem>>) attributes {dimension_semantics = [#tpu.dimension_semantics<parallel>, #tpu.dimension_semantics<parallel>], iteration_bounds = array<i64: 1, 1>, scalar_prefetch = 0 : i64, scratch_operands = 0 : i64, tpu.core_type = #tpu.core_type<tc>, window_params = [{transform_indices = @transform_0, window_bounds = array<i64: 16, 32>}, {transform_indices = @transform_1, window_bounds = array<i64: 32, 32>}, {transform_indices = @transform_2, window_bounds = array<i64: 1, 32>}, {transform_indices = @transform_3, window_bounds = array<i64: 16, 32>}, {transform_indices = @transform_4, window_bounds = array<i64: 16, 32>}]} {
    %c0 = arith.constant 0 : index
    %c0_0 = arith.constant 0 : index
    %0 = vector.load %arg2[%c0, %c0_0] : memref<16x32xbf16, #tpu.memory_space<vmem>>, vector<16x32xbf16>
    %c0_1 = arith.constant 0 : index
    %c0_2 = arith.constant 0 : index
    %1 = vector.load %arg3[%c0_1, %c0_2] : memref<32x32xbf16, #tpu.memory_space<vmem>>, vector<32x32xbf16>
    %cst = arith.constant dense<0.000000e+00> : vector<16x32xf32>
    %2 = tpu.matmul %0, %1, %cst {dimension_numbers = #tpu.dot_dimension_numbers<[1], [0], [0], [1], [0, 0, 1, 1], [], []>} : vector<16x32xbf16>, vector<32x32xbf16>, vector<16x32xf32> -> vector<16x32xf32>
    %c0_3 = arith.constant 0 : index
    %c0_4 = arith.constant 0 : index
    %3 = vector.load %arg4[%c0_3, %c0_4] : memref<1x32xf32, #tpu.memory_space<vmem>>, vector<1x32xf32>
    %4 = vector.broadcast %3 : vector<1x32xf32> to vector<16x32xf32>
    %5 = arith.addf %2, %4 : vector<16x32xf32>
    %c0_5 = arith.constant 0 : index
    %c0_6 = arith.constant 0 : index
    %6 = vector.load %arg5[%c0_5, %c0_6] : memref<16x32xf32, #tpu.memory_space<vmem>>, vector<16x32xf32>
    %7 = arith.addf %5, %6 : vector<16x32xf32>
    %c0_7 = arith.constant 0 : index
    %c0_8 = arith.constant 0 : index
    %8 = vector.load %arg6[%c0_7, %c0_8] : memref<16x32xf32, #tpu.memory_space<vmem>>, vector<16x32xf32>
    tpu.vector_store %arg6[%c0_7, %c0_8], %7 {strides = array<i32>} : memref<16x32xf32, #tpu.memory_space<vmem>>, vector<16x32xf32>,
    return
  }
  func.func @transform_0(%arg0: i32, %arg1: i32) -> (i32, i32) {
    %c0_i32 = arith.constant 0 : i32
    %c0_i32_0 = arith.constant 0 : i32
    return %arg0, %c0_i32 : i32, i32
  }
  func.func @transform_1(%arg0: i32, %arg1: i32) -> (i32, i32) {
    %c0_i32 = arith.constant 0 : i32
    %c0_i32_0 = arith.constant 0 : i32
    return %c0_i32, %arg1 : i32, i32
  }
  func.func @transform_2(%arg0: i32, %arg1: i32) -> (i32, i32) {
    %c0_i32 = arith.constant 0 : i32
    %c0_i32_0 = arith.constant 0 : i32
    return %c0_i32, %arg1 : i32, i32
  }
  func.func @transform_3(%arg0: i32, %arg1: i32) -> (i32, i32) {
    %c0_i32 = arith.constant 0 : i32
    return %arg0, %arg1 : i32, i32
  }
  func.func @transform_4(%arg0: i32, %arg1: i32) -> (i32, i32) {
    %c0_i32 = arith.constant 0 : i32
    return %arg0, %arg1 : i32, i32
  }
}

module attributes {stable_mosaic.version = 11 : i64} {
  func.func @_ln_linear_kernel(%arg0: i32, %arg1: i32, %arg2: memref<16x32xf32, #tpu.memory_space<vmem>>, %arg3: memref<1x32xf32, #tpu.memory_space<vmem>>, %arg4: memref<1x32xf32, #tpu.memory_space<vmem>>, %arg5: memref<32x128xbf16, #tpu.memory_space<vmem>>, %arg6: memref<1x128xf32, #tpu.memory_space<vmem>>, %arg7: memref<16x128xbf16, #tpu.memory_space<vmem>>, %arg8: memref<16x32xbf16, #tpu.memory_space<vmem>>) attributes {dimension_semantics = [#tpu.dimension_semantics<parallel>, #tpu.dimension_semantics<arbitrary>], iteration_bounds = array<i64: 1, 1>, scalar_prefetch = 0 : i64, scratch_operands = 1 : i64, tpu.core_type = #tpu.core_type<tc>, window_params = [{transform_indices = @transform_0, window_bounds = array<i64: 16, 32>}, {pipeline_mode = #tpu.pipeline_mode<synchronous>, transform_indices = @transform_1, window_bounds = array<i64: 1, 32>}, {pipeline_mode = #tpu.pipeline_mode<synchronous>, transform_indices = @transform_2, window_bounds = array<i64: 1, 32>}, {transform_indices = @transform_3, window_bounds = array<i64: 32, 128>}, {transform_indices = @transform_4, window_bounds = array<i64: 1, 128>}, {transform_indices = @transform_5, window_bounds = array<i64: 16, 128>}]} {
    %c0_i32 = arith.constant 0 : i32
    %0 = arith.cmpi eq, %arg1, %c0_i32 : i32
    %1 = arith.extui %0 : i1 to i32
    %c0_i32_0 = arith.constant 0 : i32
    %2 = arith.cmpi ne, %1, %c0_i32_0 : i32
    scf.if %2 {
      %c0_10 = arith.constant 0 : index
      %c0_11 = arith.constant 0 : index
      %19 = vector.load %arg2[%c0_10, %c0_11] : memref<16x32xf32, #tpu.memory_space<vmem>>, vector<16x32xf32>
      %cst_12 = arith.constant dense<0.000000e+00> : vector<16xf32>
      %20 = vector.multi_reduction <add>, %19, %cst_12 [1] : vector<16x32xf32> to vector<16xf32>
      %21 = vector.shape_cast %20 : vector<16xf32> to vector<16x1xf32>
      %cst_13 = arith.constant 3.200000e+01 : f32
      %22 = vector.broadcast %cst_13 : f32 to vector<16x1xf32>
      %23 = arith.divf %21, %22 : vector<16x1xf32>
      %24 = vector.broadcast %23 : vector<16x1xf32> to vector<16x32xf32>
      %25 = arith.subf %19, %24 : vector<16x32xf32>
      %26 = arith.mulf %25, %25 : vector<16x32xf32>
      %cst_14 = arith.constant dense<0.000000e+00> : vector<16xf32>
      %27 = vector.multi_reduction <add>, %26, %cst_14 [1] : vector<16x32xf32> to vector<16xf32>
      %28 = vector.shape_cast %27 : vector<16xf32> to vector<16x1xf32>
      %cst_15 = arith.constant 3.200000e+01 : f32
      %29 = vector.broadcast %cst_15 : f32 to vector<16x1xf32>
      %30 = arith.divf %28, %29 : vector<16x1xf32>
      %31 = vector.broadcast %23 : vector<16x1xf32> to vector<16x32xf32>
      %32 = arith.subf %19, %31 : vector<16x32xf32>
      %cst_16 = arith.constant 9.99999974E-6 : f32
      %33 = vector.broadcast %cst_16 : f32 to vector<16x1xf32>
      %34 = arith.addf %30, %33 : vector<16x1xf32>
      %35 = math.rsqrt %34 : vector<16x1xf32>
      %36 = vector.broadcast %35 : vector<16x1xf32> to vector<16x32xf32>
      %37 = arith.mulf %32, %36 : vector<16x32xf32>
      %c0_17 = arith.constant 0 : index
      %c0_18 = arith.constant 0 : index
      %38 = vector.load %arg3[%c0_17, %c0_18] : memref<1x32xf32, #tpu.memory_space<vmem>>, vector<1x32xf32>
      %39 = vector.broadcast %38 : vector<1x32xf32> to vector<16x32xf32>
      %40 = arith.mulf %37, %39 : vector<16x32xf32>
      %c0_19 = arith.constant 0 : index
      %c0_20 = arith.constant 0 : index
      %41 = vector.load %arg4[%c0_19, %c0_20] : memref<1x32xf32, #tpu.memory_space<vmem>>, vector<1x32xf32>
      %42 = vector.broadcast %41 : vector<1x32xf32> to vector<16x32xf32>
      %43 = arith.addf %40, %42 : vector<16x32xf32>
      %44 = arith.truncf %43 : vector<16x32xf32> to vector<16x32xbf16>
      %c0_21 = arith.constant 0 : index
      %c0_22 = arith.constant 0 : index
      %45 = vector.load %arg8[%c0_21, %c0_22] : memref<16x32xbf16, #tpu.memory_space<vmem>>, vector<16x32xbf16>
      tpu.vector_store %arg8[%c0_21, %c0_22], %44 {strides = array<i32>} : memref<16x32xbf16, #tpu.memory_space<vmem>>, vector<16x32xbf16>,
    } else {
    }
    %c0 = arith.constant 0 : index
    %c0_1 = arith.constant 0 : index
    %3 = vector.load %arg8[%c0, %c0_1] : memref<16x32xbf16, #tpu.memory_space<vmem>>, vector<16x32xbf16>
    %c0_2 = arith.constant 0 : index
    %c0_3 = arith.constant 0 : index
    %4 = vector.load %arg5[%c0_2, %c0_3] : memref<32x128xbf16, #tpu.memory_space<vmem>>, vector<32x128xbf16>
    %cst = arith.constant dense<0.000000e+00> : vector<16x128xf32>
    %5 = tpu.matmul %3, %4, %cst {dimension_numbers = #tpu.dot_dimension_numbers<[1], [0], [0], [1], [0, 0, 1, 1], [], []>} : vector<16x32xbf16>, vector<32x128xbf16>, vector<16x128xf32> -> vector<16x128xf32>
    %c0_4 = arith.constant 0 : index
    %c0_5 = arith.constant 0 : index
    %6 = vector.load %arg6[%c0_4, %c0_5] : memref<1x128xf32, #tpu.memory_space<vmem>>, vector<1x128xf32>
    %7 = vector.broadcast %6 : vector<1x128xf32> to vector<16x128xf32>
    %8 = arith.addf %5, %7 : vector<16x128xf32>
    %cst_6 = arith.constant 1.702000e+00 : f32
    %9 = vector.broadcast %cst_6 : f32 to vector<16x128xf32>
    %10 = arith.mulf %9, %8 : vector<16x128xf32>
    %11 = arith.negf %10 : vector<16x128xf32>
    %12 = math.exp %11 : vector<16x128xf32>
    %cst_7 = arith.constant 1.000000e+00 : f32
    %13 = vector.broadcast %cst_7 : f32 to vector<16x128xf32>
    %14 = arith.addf %13, %12 : vector<16x128xf32>
    %15 = arith.divf %13, %14 : vector<16x128xf32>
    %16 = arith.mulf %8, %15 : vector<16x128xf32>
    %17 = arith.truncf %16 : vector<16x128xf32> to vector<16x128xbf16>
    %c0_8 = arith.constant 0 : index
    %c0_9 = arith.constant 0 : index
    %18 = vector.load %arg7[%c0_8, %c0_9] : memref<16x128xbf16, #tpu.memory_space<vmem>>, vector<16x128xbf16>
    tpu.vector_store %arg7[%c0_8, %c0_9], %17 {strides = array<i32>} : memref<16x128xbf16, #tpu.memory_space<vmem>>, vector<16x128xbf16>,
    return
  }
  func.func @transform_0(%arg0: i32, %arg1: i32) -> (i32, i32) {
    %c0_i32 = arith.constant 0 : i32
    %c0_i32_0 = arith.constant 0 : i32
    return %arg0, %c0_i32 : i32, i32
  }
  func.func @transform_1(%arg0: i32, %arg1: i32) -> (i32, i32) {
    %c0_i32 = arith.constant 0 : i32
    %c0_i32_0 = arith.constant 0 : i32
    %c0_i32_1 = arith.constant 0 : i32
    return %c0_i32, %c0_i32_0 : i32, i32
  }
  func.func @transform_2(%arg0: i32, %arg1: i32) -> (i32, i32) {
    %c0_i32 = arith.constant 0 : i32
    %c0_i32_0 = arith.constant 0 : i32
    %c0_i32_1 = arith.constant 0 : i32
    return %c0_i32, %c0_i32_0 : i32, i32
  }
  func.func @transform_3(%arg0: i32, %arg1: i32) -> (i32, i32) {
    %c0_i32 = arith.constant 0 : i32
    %c0_i32_0 = arith.constant 0 : i32
    return %c0_i32, %arg1 : i32, i32
  }
  func.func @transform_4(%arg0: i32, %arg1: i32) -> (i32, i32) {
    %c0_i32 = arith.constant 0 : i32
    %c0_i32_0 = arith.constant 0 : i32
    return %c0_i32, %arg1 : i32, i32
  }
  func.func @transform_5(%arg0: i32, %arg1: i32) -> (i32, i32) {
    %c0_i32 = arith.constant 0 : i32
    return %arg0, %arg1 : i32, i32
  }
}

module attributes {stable_mosaic.version = 11 : i64} {
  func.func @_linear_res_fullk_kernel(%arg0: i32, %arg1: i32, %arg2: memref<16x128xbf16, #tpu.memory_space<vmem>>, %arg3: memref<128x32xbf16, #tpu.memory_space<vmem>>, %arg4: memref<1x32xf32, #tpu.memory_space<vmem>>, %arg5: memref<16x32xf32, #tpu.memory_space<vmem>>, %arg6: memref<16x32xf32, #tpu.memory_space<vmem>>) attributes {dimension_semantics = [#tpu.dimension_semantics<parallel>, #tpu.dimension_semantics<parallel>], iteration_bounds = array<i64: 1, 1>, scalar_prefetch = 0 : i64, scratch_operands = 0 : i64, tpu.core_type = #tpu.core_type<tc>, window_params = [{transform_indices = @transform_0, window_bounds = array<i64: 16, 128>}, {transform_indices = @transform_1, window_bounds = array<i64: 128, 32>}, {transform_indices = @transform_2, window_bounds = array<i64: 1, 32>}, {transform_indices = @transform_3, window_bounds = array<i64: 16, 32>}, {transform_indices = @transform_4, window_bounds = array<i64: 16, 32>}]} {
    %c0 = arith.constant 0 : index
    %c0_0 = arith.constant 0 : index
    %0 = vector.load %arg2[%c0, %c0_0] : memref<16x128xbf16, #tpu.memory_space<vmem>>, vector<16x128xbf16>
    %c0_1 = arith.constant 0 : index
    %c0_2 = arith.constant 0 : index
    %1 = vector.load %arg3[%c0_1, %c0_2] : memref<128x32xbf16, #tpu.memory_space<vmem>>, vector<128x32xbf16>
    %cst = arith.constant dense<0.000000e+00> : vector<16x32xf32>
    %2 = tpu.matmul %0, %1, %cst {dimension_numbers = #tpu.dot_dimension_numbers<[1], [0], [0], [1], [0, 0, 1, 1], [], []>} : vector<16x128xbf16>, vector<128x32xbf16>, vector<16x32xf32> -> vector<16x32xf32>
    %c0_3 = arith.constant 0 : index
    %c0_4 = arith.constant 0 : index
    %3 = vector.load %arg4[%c0_3, %c0_4] : memref<1x32xf32, #tpu.memory_space<vmem>>, vector<1x32xf32>
    %4 = vector.broadcast %3 : vector<1x32xf32> to vector<16x32xf32>
    %5 = arith.addf %2, %4 : vector<16x32xf32>
    %c0_5 = arith.constant 0 : index
    %c0_6 = arith.constant 0 : index
    %6 = vector.load %arg5[%c0_5, %c0_6] : memref<16x32xf32, #tpu.memory_space<vmem>>, vector<16x32xf32>
    %7 = arith.addf %5, %6 : vector<16x32xf32>
    %c0_7 = arith.constant 0 : index
    %c0_8 = arith.constant 0 : index
    %8 = vector.load %arg6[%c0_7, %c0_8] : memref<16x32xf32, #tpu.memory_space<vmem>>, vector<16x32xf32>
    tpu.vector_store %arg6[%c0_7, %c0_8], %7 {strides = array<i32>} : memref<16x32xf32, #tpu.memory_space<vmem>>, vector<16x32xf32>,
    return
  }
  func.func @transform_0(%arg0: i32, %arg1: i32) -> (i32, i32) {
    %c0_i32 = arith.constant 0 : i32
    %c0_i32_0 = arith.constant 0 : i32
    return %arg0, %c0_i32 : i32, i32
  }
  func.func @transform_1(%arg0: i32, %arg1: i32) -> (i32, i32) {
    %c0_i32 = arith.constant 0 : i32
    %c0_i32_0 = arith.constant 0 : i32
    return %c0_i32, %arg1 : i32, i32
  }
  func.func @transform_2(%arg0: i32, %arg1: i32) -> (i32, i32) {
    %c0_i32 = arith.constant 0 : i32
    %c0_i32_0 = arith.constant 0 : i32
    return %c0_i32, %arg1 : i32, i32
  }
  func.func @transform_3(%arg0: i32, %arg1: i32) -> (i32, i32) {
    %c0_i32 = arith.constant 0 : i32
    return %arg0, %arg1 : i32, i32
  }
  func.func @transform_4(%arg0: i32, %arg1: i32) -> (i32, i32) {
    %c0_i32 = arith.constant 0 : i32
    return %arg0, %arg1 : i32, i32
  }
}

</mosaic_0001>

<bundles_post_ra>
// kernel: transformer_forward.12
= control target key start
LH: loop header
LB: loop body
LE: loop exit
PB: predicated region body
PF: predicated region fallthrough
CT: control target
= control target key end

     0   :  { %vm45_vm0 = vcmask 261120   ;;  %s139_s1 = inlined_call_operand.vmem [shape: bf16[32,32], index: 1, kind: input, shape index: {}]   ;;  %s140_s2 = inlined_call_operand.vmem [shape: f32[1,32], index: 2, kind: input, shape index: {}]   ;;  %s141_s0 = inlined_call_operand.vmem [shape: bf16[16,32], index: 0, kind: input, shape index: {}]   ;;  %s142_s3 = inlined_call_operand.vmem [shape: f32[16,32], index: 3, kind: input, shape index: {}, may-alias: {3,4}]   ;;  %s143_s4 = inlined_call_operand.vmem [shape: f32[16,32], index: 4, kind: output, shape index: {}, may-alias: {3,4}]  }
   0x1   :  { %v88_v0 = vld [vmem:[%s139_s1 + $0x8] sm:$0xff]  ;;  %v87_v1 = vld [vmem:[%s139_s1] sm:$0xff] }
   0x2   :  { %55 = vmatpush.bf16.msra.mxu0 %v88_v0  ;;  %v86_v2 = vld [vmem:[%s141_s0] sm:$0xff] }
   0x3   :  { %v89_v3 = vld [vmem:[%s140_s2] ss:$0 sm:$0xff] }
   0x4   :  { %v63_v5 = vld [vmem:[%s142_s3] sm:$0xff] }
   0x6   :  { %56 = vmatpush.bf16.msra.mxu0 %v87_v1 }
   0x9   :  { %85 = vmatmul.msk.bf16.vlgmr.msra.gmra.mxu0 %vm45_vm0, %v86_v2 }
  0x86   :  { %v58_v4 = vpop.f32.mrf.mxu0 }
  0x87   :  { %v59_v6 = vadd.f32 %v89_v3, %v58_v4 }
  0x89   :  { %v65_v7 = vadd.f32 %v63_v5, %v59_v6 }
  0x8b   :  { %67 = vst.msk [vmem:[%s143_s4] sm:$0xff] %vm45_vm0, %v65_v7 }
  0x8e   :  { %v60_v8 = vpop.f32.mrf.mxu0 }
  0x8f   :  { %v61_v10 = vadd.f32 %v89_v3, %v60_v8 }
  0x92   :  { %v64_v9 = vld [vmem:[%s142_s3 + $0x8] sm:$0xff] }
  0x93   :  { %v66_v11 = vadd.f32 %v64_v9, %v61_v10 }
  0x95   :  { %68 = vst.msk [vmem:[%s143_s4 + $0x8] sm:$0xff] %vm45_vm0, %v66_v11 }

// kernel: transformer_forward.11
= control target key start
LH: loop header
LB: loop body
LE: loop exit
PB: predicated region body
PF: predicated region fallthrough
CT: control target
= control target key end

     0   :  { %s777_s15 = smov 0   ;;  %s779_s16 = smov 0   ;;  %s878_s0 = inlined_call_operand.vmem [shape: bf16[2,4,8,8], index: 0, kind: input, shape index: {}]   ;;  %s879_s1 = inlined_call_operand.vmem [shape: bf16[2,4,8,8], index: 1, kind: input, shape index: {}]   ;;  %s880_s2 = inlined_call_operand.vmem [shape: bf16[2,4,8,8], index: 2, kind: input, shape index: {}]   ;;  %s881_s3 = inlined_call_operand.vmem [shape: f32[2,1,8], index: 3, kind: input, shape index: {}]   ;;  %s882_s4 = inlined_call_operand.vmem [shape: bf16[2,8,32], index: 4, kind: output, shape index: {}]  }
   0x1   :  { %s781_s17 = smov 0  }
   0x2 LB: > { %s26_s18 = sadd.s32 1, %s743_s16  ;;  %p651_p0 = scmp.ge.s32.totalorder %s747_s17, 1  ;;  %s747_s17 = sphi %s781_s17, %s14_s17   ;;  %s743_s16 = sphi %s779_s16, %s884_s16   ;;  %s739_s15 = sphi %s777_s15, %s883_s15  }
   0x3   : > { %p28_p1 = scmp.ge.s32.totalorder %s26_s18, 2  ;;  %p209_p2 = scmp.lt.s32.totalorder %s747_s17, 3 }
   0x5   : > { %s886_s18 = smov (%p28_p1, %s26_s18), 0  ;;  %p210_p3 = pnand %p651_p0, %p209_p2 }
   0x6   : > { %p253_p4 = scmp.lt.s32.totalorder (!%p210_p3), %s739_s15, 1  ;;  %s749_s6 = smov (!%p210_p3), 8  }
   0x7   : > { %213 = sbr.rel (%p210_p3) target bundleno = 1064 (0x428), region = 36  ;;  %s750_s7 = smov (!%p210_p3), 24  }
   0x8   : > { %s751_s8 = smov (!%p210_p3), 16  }
   0xc   : > { %s888_s15 = smov (!%p253_p4, %s739_s15), 1  ;;  %vm289_vm0 = vcmask 64512   ;;  %vm326_vm1 = vcmask 1043456   ;;  %vm530_vm2 = vcmask 130048   ;;  %vm532_vm3 = vcmask 195584  }
   0xd   : > { %s798_s19 = sshll.u32 %s888_s15, 4  ;;  %s273_s28 = scalar_lea.vmem %s881_s3, %s888_s15  ;;  %vm535_vm4 = vcmask 257024  }
   0xe   : > { %s804_s22 = scalar_lea.vmem %s879_s1, %s798_s19  ;;  %s816_s25 = scalar_lea.vmem %s878_s0, %s798_s19  ;;  %v828_v9 = vld [vmem:[%s273_s28] ss:$0 sm:$0xff] }
   0xf   : > { %v287_v0 = vld [vmem:[%s804_s22] sm:$0xf]  ;;  %v662_v1 = vld [vmem:[%s804_s22 + $0x4] sm:$0xf]  ;;  %v672_v4 = vld [vmem:[%s804_s22 + $0xc] sm:$0xf]  ;;  %s842_s5 = scalar_lea.vmem %s880_s2, %s798_s19 }
  0x10   : > { %v294_v2 = vsel %vm289_vm0, %v287_v0, 0  ;;  %v353_v3 = vsel %vm289_vm0, %v662_v1, 0  ;;  %v469_v5 = vsel %vm289_vm0, %v672_v4, 0  ;;  %v286_v6 = vld [vmem:[%s816_s25] sm:$0xf]  ;;  %s658_s9 = sshll.u32 %s888_s15, 2 }
  0x11   : > { %303 = vmatpush.bf16.xpose.msra.mxu0 %v294_v2  ;;  %362 = vmatpush.bf16.xpose.msra.mxu2 %v353_v3  ;;  %v661_v7 = vld [vmem:[%s816_s25 + $0x4] sm:$0xf]  ;;  %v671_v8 = vld [vmem:[%s816_s25 + $0xc] sm:$0xf]  ;;  %v288_v35 = vld [vmem:[%s842_s5] sm:$0xf]  ;;  %s280_s12 = scalar_lea.vmem %s882_s4, %s658_s9 }
  0x12   : > { %v328_v36 = vsel %vm326_vm1, %v288_v35, 0  ;;  %v667_v37 = vld [vmem:[%s804_s22 + $0x8] sm:$0xf]  ;;  %v663_v38 = vld [vmem:[%s842_s5 + $0x4] sm:$0xf] }
  0x13   : > { %337 = vmatpush.bf16.msra.mxu1 %v328_v36  ;;  %v411_v39 = vsel %vm289_vm0, %v667_v37, 0  ;;  %v386_v40 = vsel %vm326_vm1, %v663_v38, 0  ;;  %v666_v50 = vld [vmem:[%s816_s25 + $0x8] sm:$0xf]  ;;  %v673_v0 = vld [vmem:[%s842_s5 + $0xc] sm:$0xf] }
  0x14   : > { %395 = vmatpush.bf16.msra.mxu3 %v386_v40  ;;  %v502_v1 = vsel %vm326_vm1, %v673_v0, 0  ;;  %v668_v2 = vld [vmem:[%s842_s5 + $0x8] sm:$0xf] }
  0x15   : > { %v444_v3 = vsel %vm326_vm1, %v668_v2, 0 }
  0x17   : > { %420 = vmatpush.bf16.xpose.msrb.mxu1 %v411_v39 }
  0x18   : > { %659 = vmatmul.msk.bf16.vlgmr.msra.gmra.mxu0 %vm289_vm0, %v286_v6  ;;  %664 = vmatmul.msk.bf16.vlgmr.msra.gmra.mxu2 %vm289_vm0, %v661_v7 }
  0x19   : > { %478 = vmatpush.bf16.xpose.msrb.mxu0 %v469_v5  ;;  %511 = vmatpush.bf16.msrb.mxu2 %v502_v1 }
  0x1a   : > { %453 = vmatpush.bf16.msrb.mxu3 %v444_v3 }
  0x28   : > { %674 = vmatmul.msk.bf16.vlgmr.msrb.gmra.mxu0 %vm289_vm0, %v671_v8 }
  0x95   : > { %v305_v10 = vpop.f32.mrf.mxu0 }
  0x96   : > { %v309_v11 = vmul.f32 0.35355338, %v305_v10 }
  0x98   : > { %v310_v12 = vadd.f32 %v828_v9, %v309_v11 }
  0x9a   : > { %v311_v13 = vsel %vm289_vm0, %v310_v12, -inf }
  0x9b   : > { %v364_v14 = vpop.f32.mrf.mxu2  ;;  %312 = vmax.xlane.f32.xlu0 %v311_v13 }
  0x9c   : > { %v368_v15 = vmul.f32 0.35355338, %v364_v14 }
  0x9d   : > { %v307_v16 = vpop.f32.mrf.mxu0 }
  0x9e   : > { %v369_v17 = vadd.f32 %v828_v9, %v368_v15 }
  0xa0   : > { %v370_v18 = vsel %vm289_vm0, %v369_v17, -inf }
  0xa1   : > { %371 = vmax.xlane.f32.xlu1 %v370_v18 }
  0xa3   : > { %v366_v19 = vpop.f32.mrf.mxu2 }
  0xa5   : > { %v480_v20 = vpop.f32.mrf.mxu0 }
  0xa6   : > { %v484_v21 = vmul.f32 0.35355338, %v480_v20 }
  0xa8   : > { %v485_v22 = vadd.f32 %v828_v9, %v484_v21 }
  0xaa   : > { %v486_v23 = vsel %vm289_vm0, %v485_v22, -inf }
  0xab   : > { %487 = vmax.xlane.f32.xlu2 %v486_v23 }
  0xad   : > { %v482_v24 = vpop.f32.mrf.mxu0 }
 0x10e   : > { %v313_v25 = vpop.xlane.xlu0 %312 }
 0x10f   : > { %v314_v26 = vsub.f32 %v310_v12, %v313_v25 }
 0x111   : > { %v315_v27 = vmul.f32 1.442695, %v314_v26 }
 0x113   : > { %709 = vpow2.f32 %v315_v27 }
 0x114   : > { %v372_v28 = vpop.xlane.xlu1 %371 }
 0x115   : > { %v373_v29 = vsub.f32 %v369_v17, %v372_v28 }
 0x117   : > { %v374_v30 = vmul.f32 1.442695, %v373_v29 }
 0x119   : > { %v710_v31 = vpop.eup %709  ;;  %711 = vpow2.f32 %v374_v30 }
 0x11a   : > { %v317_v32 = vsel %vm289_vm0, %v710_v31, 0.0 }
 0x11b   : > { %318 = vadd.xlane.f32.xlu0 %v317_v32 }
 0x11e   : > { %v488_v41 = vpop.xlane.xlu2 %487 }
 0x11f   : > { %v712_v33 = vpop.eup %711  ;;  %v489_v53 = vsub.f32 %v485_v22, %v488_v41 }
 0x120   : > { %v376_v34 = vsel %vm289_vm0, %v712_v33, 0.0 }
 0x121   : > { %377 = vadd.xlane.f32.xlu2 %v376_v34  ;;  %v490_v55 = vmul.f32 1.442695, %v489_v53 }
 0x18e   : > { %v319_v42 = vpop.xlane.xlu0 %318 }
 0x18f   : > { %713 = vrcp.f32 %v319_v42 }
 0x194   : > { %v378_v43 = vpop.xlane.xlu2 %377 }
 0x195   : > { %v714_v44 = vpop.eup %713  ;;  %715 = vrcp.f32 %v378_v43 }
 0x196   : > { %v321_v45 = vmul.f32 %v714_v44, %v710_v31  ;;  %717 = vpow2.f32 %v490_v55 }
 0x198   : > { %v322_v46 = vpack.c.bf16 %v321_v45, %v321_v45 }
 0x19a   : > { %660 = vmatmul.msk.bf16.vlgmr.msra.gmra.mxu1 %vm289_vm0, %v322_v46 }
 0x19b   : > { %v716_v47 = vpop.eup %715 }
 0x19c   : > { %v380_v48 = vmul.f32 %v716_v47, %v712_v33  ;;  %v718_v61 = vpop.eup %717 }
 0x19d   : > { %v492_v63 = vsel %vm289_vm0, %v718_v61, 0.0 }
 0x19e   : > { %v381_v49 = vpack.c.bf16 %v380_v48, %v380_v48 }
 0x1a0   : > { %665 = vmatmul.msk.bf16.vlgmr.msra.gmra.mxu3 %vm289_vm0, %v381_v49 }
 0x1aa   : > { %669 = vmatmul.msk.bf16.vlgmr.msrb.gmra.mxu1 %vm289_vm0, %v666_v50 }
 0x217   : > { %v339_v51 = vpop.f32.mrf.mxu1 }
 0x21f   : > { %v341_v52 = vpop.f32.mrf.mxu1 }
 0x223   : > { %v397_v54 = vpop.f32.mrf.mxu3 }
 0x224   : > { %518 = vrot.lane.b32.xlu2 %v397_v54, %s749_s6 }
 0x227   : > { %v422_v56 = vpop.f32.mrf.mxu1 }
 0x228   : > { %v426_v57 = vmul.f32 0.35355338, %v422_v56 }
 0x22a   : > { %v427_v58 = vadd.f32 %v828_v9, %v426_v57 }
 0x22b   : > { %v399_v59 = vpop.f32.mrf.mxu3 }
 0x22c   : > { %v428_v60 = vsel %vm289_vm0, %v427_v58, -inf }
 0x22d   : > { %429 = vmax.xlane.f32.xlu1 %v428_v60 }
 0x22f   : > { %v424_v62 = vpop.f32.mrf.mxu1 }
 0x235   : > { %493 = vadd.xlane.f32.xlu1 %v492_v63 }
 0x27e   : > { %v519_v21 = vpop.permute.xlu2 %518 }
 0x27f   : > { %v529_v22 = vsel %vm289_vm0, %v339_v51, %v519_v21 }
 0x2a0   : > { %v430_v4 = vpop.xlane.xlu1 %429 }
 0x2a1   : > { %v431_v5 = vsub.f32 %v427_v58, %v430_v4 }
 0x2a3   : > { %v432_v6 = vmul.f32 1.442695, %v431_v5 }
 0x2a5   : > { %719 = vpow2.f32 %v432_v6 }
 0x2a8   : > { %v494_v7 = vpop.xlane.xlu1 %493 }
 0x2a9   : > { %721 = vrcp.f32 %v494_v7 }
 0x2ab   : > { %v720_v8 = vpop.eup %719 }
 0x2ac   : > { %v434_v9 = vsel %vm289_vm0, %v720_v8, 0.0 }
 0x2ad   : > { %435 = vadd.xlane.f32.xlu0 %v434_v9 }
 0x2af   : > { %v722_v10 = vpop.eup %721 }
 0x2b0   : > { %v496_v11 = vmul.f32 %v722_v10, %v718_v61 }
 0x2b2   : > { %v497_v12 = vpack.c.bf16 %v496_v11, %v496_v11 }
 0x2b4   : > { %675 = vmatmul.msk.bf16.vlgmr.msrb.gmra.mxu2 %vm289_vm0, %v497_v12 }
 0x320   : > { %v436_v13 = vpop.xlane.xlu0 %435 }
 0x321   : > { %723 = vrcp.f32 %v436_v13 }
 0x327   : > { %v724_v14 = vpop.eup %723 }
 0x328   : > { %v438_v15 = vmul.f32 %v724_v14, %v720_v8 }
 0x32a   : > { %v439_v16 = vpack.c.bf16 %v438_v15, %v438_v15 }
 0x32c   : > { %670 = vmatmul.msk.bf16.vlgmr.msrb.gmra.mxu3 %vm289_vm0, %v439_v16 }
 0x337   : > { %v513_v17 = vpop.f32.mrf.mxu2 }
 0x338   : > { %526 = vrot.lane.b32.xlu1 %v513_v17, %s750_s7 }
 0x33f   : > { %v515_v18 = vpop.f32.mrf.mxu2 }
 0x3aa   : > { %v527_v24 = vpop.permute.xlu1 %526 }
 0x3af   : > { %v455_v19 = vpop.f32.mrf.mxu3 }
 0x3b0   : > { %522 = vrot.lane.b32.xlu0 %v455_v19, %s751_s8 }
 0x3b7   : > { %v457_v20 = vpop.f32.mrf.mxu3 }
 0x422   : > { %v523_v23 = vpop.permute.xlu0 %522 }
 0x423   : > { %v531_v25 = vsel %vm530_vm2, %v529_v22, %v523_v23 }
 0x424   : > { %v533_v26 = vsel %vm532_vm3, %v531_v25, %v527_v24 }
 0x425   : > { %v534_v27 = vpack.c.bf16 %v533_v26, %v533_v26 }
 0x427   : > { %536 = vst.msk [vmem:[%s280_s12] sm:$0xf] %vm535_vm4, %v534_v27 }
 0x428 PF: > { %s14_s17 = sadd.s32 1, %s747_s17   ;;  %s883_s15 = smov %s743_s16 }
 0x429   : > { %p11_p5 = scmp.ge.s32.totalorder %s14_s17, 4   ;;  %s884_s16 = smov %s886_s18 }
 0x42b   :  { %13 = sbr.rel (!%p11_p5) target bundleno = 2 (0x2), region = 84 }

// kernel: transformer_forward.10
= control target key start
LH: loop header
LB: loop body
LE: loop exit
PB: predicated region body
PF: predicated region fallthrough
CT: control target
= control target key end

     0   :  { %vm27_vm0 = vcmask 261120   ;;  %v176_v4 = vmov 32.0   ;;  %vm93_vm6 = vcmask 257024   ;;  %vm143_vm9 = vcmask 781312   ;;  %s239_s0 = inlined_call_operand.vmem [shape: f32[16,32], index: 0, kind: input, shape index: {}]   ;;  %s240_s1 = inlined_call_operand.vmem [shape: f32[1,32], index: 1, kind: input, shape index: {}]   ;;  %s241_s2 = inlined_call_operand.vmem [shape: f32[1,32], index: 2, kind: input, shape index: {}]   ;;  %s242_s4 = inlined_call_operand.vmem [shape: f32[1,96], index: 4, kind: input, shape index: {}]   ;;  %s243_s3 = inlined_call_operand.vmem [shape: bf16[32,96], index: 3, kind: input, shape index: {}]   ;;  %s244_s5 = inlined_call_operand.vmem [shape: bf16[16,96], index: 5, kind: output, shape index: {}]  }
   0x1   :  { %v25_v0 = vld [vmem:[%s239_s0] sm:$0xff]  ;;  %v26_v2 = vld [vmem:[%s239_s0 + $0x8] sm:$0xff]  ;;  %170 = vrcp.f32 %v176_v4 }
   0x2   :  { %v28_v1 = vsel %vm27_vm0, %v25_v0, 0.0  ;;  %v31_v3 = vsel %vm27_vm0, %v26_v2, 0.0  ;;  %v165_v24 = vld [vmem:[%s243_s3 + $0x8] sm:$0xff]  ;;  %v164_v27 = vld [vmem:[%s243_s3] sm:$0xff] }
   0x3   :  { %29 = vadd.xlane.f32.xlu0 %v28_v1  ;;  %133 = vmatpush.bf16.msra.mxu0 %v165_v24  ;;  %v167_v37 = vld [vmem:[%s240_s1] ss:$0 sm:$0xff] }
   0x4   :  { %v168_v40 = vld [vmem:[%s241_s2] ss:$0 sm:$0xff] }
   0x5   :  { %v169_v54 = vld [vmem:[%s242_s4] ss:$0 sm:$0xff] }
   0x7   :  { %v171_v5 = vpop.eup %170  ;;  %134 = vmatpush.bf16.msra.mxu0 %v164_v27 }
   0x8   :  { %v35_v6 = vmul.f32 32.0, %v171_v5  ;;  %vm39_vm1 = vweird.f32 %v171_v5 }
   0xa   :  { %v36_v7 = vsub.f32 1.0, %v35_v6 }
   0xb   :  { %32 = vadd.xlane.f32.xlu0 %v31_v3 }
   0xc   :  { %v37_v8 = vmul.f32 %v171_v5, %v36_v7 }
   0xe   :  { %v38_v9 = vadd.f32 %v171_v5, %v37_v8 }
  0x10   :  { %v40_v10 = vsel %vm39_vm1, %v171_v5, %v38_v9 }
  0x76   :  { %v30_v11 = vpop.xlane.xlu0 %29 }
  0x77   :  { %v41_v12 = vmul.f32 %v40_v10, %v30_v11 }
  0x79   :  { %v43_v13 = vsub.f32 %v25_v0, %v41_v12 }
  0x7b   :  { %v45_v14 = vmul.f32 %v43_v13, %v43_v13 }
  0x7d   :  { %v47_v15 = vsel %vm27_vm0, %v45_v14, 0.0 }
  0x7e   :  { %48 = vadd.xlane.f32.xlu1 %v47_v15  ;;  %v33_v16 = vpop.xlane.xlu0 %32 }
  0x7f   :  { %v42_v17 = vmul.f32 %v40_v10, %v33_v16 }
  0x81   :  { %v44_v18 = vsub.f32 %v26_v2, %v42_v17 }
  0x83   :  { %v46_v19 = vmul.f32 %v44_v18, %v44_v18 }
  0x85   :  { %v50_v20 = vsel %vm27_vm0, %v46_v19, 0.0 }
  0x86   :  { %51 = vadd.xlane.f32.xlu1 %v50_v20 }
  0xf1   :  { %v49_v21 = vpop.xlane.xlu1 %48 }
  0xf2   :  { %v53_v22 = vmul.f32 %v49_v21, %v40_v10 }
  0xf4   :  { %v55_v23 = vadd.f32 1e-05, %v53_v22 }
  0xf6   :  { %172 = vrsqrt.f32 %v55_v23  ;;  %vm63_vm3 = vweird.f32 %v55_v23 }
  0xf9   :  { %v52_v25 = vpop.xlane.xlu1 %51 }
  0xfa   :  { %v54_v26 = vmul.f32 %v52_v25, %v40_v10 }
  0xfc   :  { %v173_v28 = vpop.eup %172  ;;  %v56_v29 = vadd.f32 1e-05, %v54_v26 }
  0xfd   :  { %v58_v30 = vmul.f32 %v173_v28, %v55_v23  ;;  %vm64_vm2 = vweird.f32 %v173_v28 }
  0xfe   :  { %174 = vrsqrt.f32 %v56_v29  ;;  %vm65_vm4 = vmor %vm63_vm3, %vm64_vm2  ;;  %vm73_vm7 = vweird.f32 %v56_v29 }
  0xff   :  { %v59_v31 = vmul.f32 %v173_v28, %v58_v30 }
 0x101   :  { %v60_v32 = vmul.f32 0.5, %v59_v31 }
 0x103   :  { %v61_v33 = vsub.f32 1.5, %v60_v32 }
 0x104   :  { %v175_v34 = vpop.eup %174 }
 0x105   :  { %v62_v35 = vmul.f32 %v173_v28, %v61_v33  ;;  %v68_v36 = vmul.f32 %v175_v34, %v56_v29  ;;  %vm74_vm5 = vweird.f32 %v175_v34 }
 0x106   :  { %vm75_vm8 = vmor %vm73_vm7, %vm74_vm5 }
 0x107   :  { %v66_v38 = vsel %vm65_vm4, %v173_v28, %v62_v35  ;;  %v69_v39 = vmul.f32 %v175_v34, %v68_v36 }
 0x108   :  { %v77_v41 = vmul.f32 %v66_v38, %v43_v13 }
 0x109   :  { %v70_v42 = vmul.f32 0.5, %v69_v39 }
 0x10a   :  { %v83_v43 = vmul.f32 %v167_v37, %v77_v41 }
 0x10b   :  { %v71_v44 = vsub.f32 1.5, %v70_v42 }
 0x10c   :  { %v89_v45 = vadd.f32 %v168_v40, %v83_v43 }
 0x10d   :  { %v72_v46 = vmul.f32 %v175_v34, %v71_v44 }
 0x10e   :  { %v91_v47 = vpack.c.bf16 %v89_v45, %v89_v45 }
 0x10f   :  { %v76_v48 = vsel %vm75_vm8, %v175_v34, %v72_v46 }
 0x110   :  { %94 = vst.msk [vmem:[#allocation2] sm:$0xf] %vm93_vm6, %v91_v47  ;;  %v78_v49 = vmul.f32 %v76_v48, %v44_v18 }
 0x112   :  { %v84_v50 = vmul.f32 %v167_v37, %v78_v49 }
 0x114   :  { %v90_v51 = vadd.f32 %v168_v40, %v84_v50 }
 0x116   :  { %v92_v52 = vpack.c.bf16 %v90_v51, %v90_v51 }
 0x118   :  { %95 = vst.msk [vmem:[#allocation2 + $0x4] sm:$0xf] %vm93_vm6, %v92_v52 }
 0x11f   :  { %v163_v53 = vld [vmem:[#allocation2] sm:$0xff] }
 0x120   :  { %162 = vmatmul.msk.bf16.vlgmr.msra.gmra.mxu0 %vm27_vm0, %v163_v53 }
 0x19d   :  { %v136_v55 = vpop.f32.mrf.mxu0 }
 0x19e   :  { %v137_v56 = vadd.f32 %v169_v54, %v136_v55 }
 0x1a0   :  { %v141_v57 = vpack.c.bf16 %v137_v56, %v137_v56 }
 0x1a2   :  { %144 = vst.msk [vmem:[%s244_s5] sm:$0xf] %vm143_vm9, %v141_v57 }
 0x1a5   :  { %v138_v58 = vpop.f32.mrf.mxu0 }
 0x1a6   :  { %v139_v59 = vadd.f32 %v169_v54, %v138_v58 }
 0x1a8   :  { %v142_v60 = vpack.c.bf16 %v139_v59, %v139_v59 }
 0x1aa   :  { %145 = vst.msk [vmem:[%s244_s5 + $0x4] sm:$0xf] %vm143_vm9, %v142_v60 }

// kernel: transformer_forward.13
= control target key start
LH: loop header
LB: loop body
LE: loop exit
PB: predicated region body
PF: predicated region fallthrough
CT: control target
= control target key end

     0   :  { %vm27_vm0 = vcmask 261120   ;;  %v232_v4 = vmov 32.0   ;;  %vm93_vm6 = vcmask 257024   ;;  %s292_s0 = inlined_call_operand.vmem [shape: f32[16,32], index: 0, kind: input, shape index: {}]   ;;  %s293_s1 = inlined_call_operand.vmem [shape: f32[1,32], index: 1, kind: input, shape index: {}]   ;;  %s294_s2 = inlined_call_operand.vmem [shape: f32[1,32], index: 2, kind: input, shape index: {}]   ;;  %s295_s4 = inlined_call_operand.vmem [shape: f32[1,128], index: 4, kind: input, shape index: {}]   ;;  %s296_s3 = inlined_call_operand.vmem [shape: bf16[32,128], index: 3, kind: input, shape index: {}]   ;;  %s297_s5 = inlined_call_operand.vmem [shape: bf16[16,128], index: 5, kind: output, shape index: {}]  }
   0x1   :  { %v25_v0 = vld [vmem:[%s292_s0] sm:$0xff]  ;;  %v26_v2 = vld [vmem:[%s292_s0 + $0x8] sm:$0xff]  ;;  %218 = vrcp.f32 %v232_v4 }
   0x2   :  { %v28_v1 = vsel %vm27_vm0, %v25_v0, 0.0  ;;  %v31_v3 = vsel %vm27_vm0, %v26_v2, 0.0  ;;  %v208_v24 = vld [vmem:[%s296_s3 + $0x8] sm:$0xff]  ;;  %v207_v27 = vld [vmem:[%s296_s3] sm:$0xff] }
   0x3   :  { %29 = vadd.xlane.f32.xlu0 %v28_v1  ;;  %133 = vmatpush.bf16.msra.mxu0 %v208_v24  ;;  %v215_v37 = vld [vmem:[%s293_s1] ss:$0 sm:$0xff] }
   0x4   :  { %v216_v40 = vld [vmem:[%s294_s2] ss:$0 sm:$0xff] }
   0x5   :  { %v217_v54 = vld [vmem:[%s295_s4] ss:$0 sm:$0xff] }
   0x7   :  { %v219_v5 = vpop.eup %218  ;;  %134 = vmatpush.bf16.msra.mxu0 %v207_v27 }
   0x8   :  { %v35_v6 = vmul.f32 32.0, %v219_v5  ;;  %vm39_vm1 = vweird.f32 %v219_v5 }
   0xa   :  { %v36_v7 = vsub.f32 1.0, %v35_v6 }
   0xb   :  { %32 = vadd.xlane.f32.xlu0 %v31_v3 }
   0xc   :  { %v37_v8 = vmul.f32 %v219_v5, %v36_v7 }
   0xe   :  { %v38_v9 = vadd.f32 %v219_v5, %v37_v8 }
  0x10   :  { %v40_v10 = vsel %vm39_vm1, %v219_v5, %v38_v9 }
  0x76   :  { %v30_v11 = vpop.xlane.xlu0 %29 }
  0x77   :  { %v41_v12 = vmul.f32 %v40_v10, %v30_v11 }
  0x79   :  { %v43_v13 = vsub.f32 %v25_v0, %v41_v12 }
  0x7b   :  { %v45_v14 = vmul.f32 %v43_v13, %v43_v13 }
  0x7d   :  { %v47_v15 = vsel %vm27_vm0, %v45_v14, 0.0 }
  0x7e   :  { %48 = vadd.xlane.f32.xlu1 %v47_v15  ;;  %v33_v16 = vpop.xlane.xlu0 %32 }
  0x7f   :  { %v42_v17 = vmul.f32 %v40_v10, %v33_v16 }
  0x81   :  { %v44_v18 = vsub.f32 %v26_v2, %v42_v17 }
  0x83   :  { %v46_v19 = vmul.f32 %v44_v18, %v44_v18 }
  0x85   :  { %v50_v20 = vsel %vm27_vm0, %v46_v19, 0.0 }
  0x86   :  { %51 = vadd.xlane.f32.xlu1 %v50_v20 }
  0xf1   :  { %v49_v21 = vpop.xlane.xlu1 %48 }
  0xf2   :  { %v53_v22 = vmul.f32 %v49_v21, %v40_v10 }
  0xf4   :  { %v55_v23 = vadd.f32 1e-05, %v53_v22 }
  0xf6   :  { %220 = vrsqrt.f32 %v55_v23  ;;  %vm63_vm3 = vweird.f32 %v55_v23 }
  0xf9   :  { %v52_v25 = vpop.xlane.xlu1 %51 }
  0xfa   :  { %v54_v26 = vmul.f32 %v52_v25, %v40_v10 }
  0xfc   :  { %v221_v28 = vpop.eup %220  ;;  %v56_v29 = vadd.f32 1e-05, %v54_v26 }
  0xfd   :  { %v58_v30 = vmul.f32 %v221_v28, %v55_v23  ;;  %vm64_vm2 = vweird.f32 %v221_v28 }
  0xfe   :  { %222 = vrsqrt.f32 %v56_v29  ;;  %vm65_vm4 = vmor %vm63_vm3, %vm64_vm2  ;;  %vm73_vm7 = vweird.f32 %v56_v29 }
  0xff   :  { %v59_v31 = vmul.f32 %v221_v28, %v58_v30 }
 0x101   :  { %v60_v32 = vmul.f32 0.5, %v59_v31 }
 0x103   :  { %v61_v33 = vsub.f32 1.5, %v60_v32 }
 0x104   :  { %v223_v34 = vpop.eup %222 }
 0x105   :  { %v62_v35 = vmul.f32 %v221_v28, %v61_v33  ;;  %v68_v36 = vmul.f32 %v223_v34, %v56_v29  ;;  %vm74_vm5 = vweird.f32 %v223_v34 }
 0x106   :  { %vm75_vm8 = vmor %vm73_vm7, %vm74_vm5 }
 0x107   :  { %v66_v38 = vsel %vm65_vm4, %v221_v28, %v62_v35  ;;  %v69_v39 = vmul.f32 %v223_v34, %v68_v36 }
 0x108   :  { %v77_v41 = vmul.f32 %v66_v38, %v43_v13 }
 0x109   :  { %v70_v42 = vmul.f32 0.5, %v69_v39 }
 0x10a   :  { %v83_v43 = vmul.f32 %v215_v37, %v77_v41 }
 0x10b   :  { %v71_v44 = vsub.f32 1.5, %v70_v42 }
 0x10c   :  { %v89_v45 = vadd.f32 %v216_v40, %v83_v43 }
 0x10d   :  { %v72_v46 = vmul.f32 %v223_v34, %v71_v44 }
 0x10e   :  { %v91_v47 = vpack.c.bf16 %v89_v45, %v89_v45 }
 0x10f   :  { %v76_v48 = vsel %vm75_vm8, %v223_v34, %v72_v46 }
 0x110   :  { %94 = vst.msk [vmem:[#allocation2] sm:$0xf] %vm93_vm6, %v91_v47  ;;  %v78_v49 = vmul.f32 %v76_v48, %v44_v18 }
 0x112   :  { %v84_v50 = vmul.f32 %v215_v37, %v78_v49 }
 0x114   :  { %v90_v51 = vadd.f32 %v216_v40, %v84_v50 }
 0x116   :  { %v92_v52 = vpack.c.bf16 %v90_v51, %v90_v51 }
 0x118   :  { %95 = vst.msk [vmem:[#allocation2 + $0x4] sm:$0xf] %vm93_vm6, %v92_v52 }
 0x11f   :  { %v206_v53 = vld [vmem:[#allocation2] sm:$0xff] }
 0x120   :  { %203 = vmatmul.msk.bf16.vlgmr.msra.gmra.mxu0 %vm27_vm0, %v206_v53 }
 0x19d   :  { %v136_v55 = vpop.f32.mrf.mxu0 }
 0x19e   :  { %v137_v56 = vadd.f32 %v217_v54, %v136_v55 }
 0x1a0   :  { %v204_v57 = vmul.f32 -1.702, %v137_v56 }
 0x1a2   :  { %v145_v58 = vmul.f32 1.442695, %v204_v57 }
 0x1a4   :  { %224 = vpow2.f32 %v145_v58 }
 0x1a5   :  { %v138_v59 = vpop.f32.mrf.mxu0 }
 0x1a6   :  { %v139_v60 = vadd.f32 %v217_v54, %v138_v59 }
 0x1a8   :  { %v205_v61 = vmul.f32 -1.702, %v139_v60 }
 0x1aa   :  { %v225_v62 = vpop.eup %224  ;;  %v147_v63 = vmul.f32 1.442695, %v205_v61 }
 0x1ab   :  { %v149_v0 = vadd.f32 1.0, %v225_v62 }
 0x1ac   :  { %226 = vpow2.f32 %v147_v63 }
 0x1ad   :  { %228 = vrcp.f32 %v149_v0  ;;  %v162_v10 = vand.u32 2147483648, %v149_v0  ;;  %vm156_vm10 = vweird.f32 %v149_v0  ;;  %v160_v11 = vand.u32 2147483647, %v149_v0 }
 0x1af   :  { %v163_v17 = vor.u32 1.1754944e-38, %v162_v10  ;;  %vm161_vm13 = vcmp.eq.f32.partialorder %v160_v11, 8.507059e+37 }
 0x1b2   :  { %v227_v1 = vpop.eup %226 }
 0x1b3   :  { %v229_v2 = vpop.eup %228  ;;  %v150_v3 = vadd.f32 1.0, %v227_v1 }
 0x1b4   :  { %v152_v4 = vmul.f32 %v229_v2, %v149_v0  ;;  %vm157_vm9 = vweird.f32 %v229_v2 }
 0x1b5   :  { %230 = vrcp.f32 %v150_v3  ;;  %vm158_vm11 = vmor %vm156_vm10, %vm157_vm9  ;;  %v177_v13 = vand.u32 2147483648, %v150_v3  ;;  %v175_v16 = vand.u32 2147483647, %v150_v3  ;;  %vm171_vm14 = vweird.f32 %v150_v3 }
 0x1b6   :  { %v153_v5 = vsub.f32 1.0, %v152_v4 }
 0x1b7   :  { %v178_v20 = vor.u32 1.1754944e-38, %v177_v13  ;;  %vm176_vm0 = vcmp.eq.f32.partialorder %v175_v16, 8.507059e+37 }
 0x1b8   :  { %v154_v6 = vmul.f32 %v229_v2, %v153_v5 }
 0x1ba   :  { %v155_v8 = vadd.f32 %v229_v2, %v154_v6 }
 0x1bb   :  { %v231_v7 = vpop.eup %230 }
 0x1bc   :  { %v167_v9 = vmul.f32 %v231_v7, %v150_v3  ;;  %v159_v14 = vsel %vm158_vm11, %v229_v2, %v155_v8  ;;  %vm172_vm12 = vweird.f32 %v231_v7 }
 0x1bd   :  { %v164_v19 = vsel %vm161_vm13, %v163_v17, %v159_v14  ;;  %vm173_vm15 = vmor %vm171_vm14, %vm172_vm12 }
 0x1be   :  { %v168_v12 = vsub.f32 1.0, %v167_v9  ;;  %v181_v23 = vmul.f32 %v164_v19, %v137_v56 }
 0x1c0   :  { %v169_v15 = vmul.f32 %v231_v7, %v168_v12 }
 0x1c2   :  { %v170_v18 = vadd.f32 %v231_v7, %v169_v15 }
 0x1c4   :  { %v174_v21 = vsel %vm173_vm15, %v231_v7, %v170_v18 }
 0x1c5   :  { %v179_v22 = vsel %vm176_vm0, %v178_v20, %v174_v21 }
 0x1c6   :  { %v182_v24 = vmul.f32 %v179_v22, %v139_v60 }
 0x1c8   :  { %v212_v25 = vpack.c.bf16 %v182_v24, %v181_v23 }
 0x1ca   :  { %213 = vst [vmem:[%s297_s5] sm:$0xff] %v212_v25  }

// kernel: transformer_forward.14
= control target key start
LH: loop header
LB: loop body
LE: loop exit
PB: predicated region body
PF: predicated region fallthrough
CT: control target
= control target key end

     0   :  { %vm111_vm0 = vcmask 261120   ;;  %s231_s1 = inlined_call_operand.vmem [shape: bf16[128,32], index: 1, kind: input, shape index: {}]   ;;  %s232_s2 = inlined_call_operand.vmem [shape: f32[1,32], index: 2, kind: input, shape index: {}]   ;;  %s233_s0 = inlined_call_operand.vmem [shape: bf16[16,128], index: 0, kind: input, shape index: {}]   ;;  %s234_s3 = inlined_call_operand.vmem [shape: f32[16,32], index: 3, kind: input, shape index: {}, may-alias: {3,4}]   ;;  %s235_s4 = inlined_call_operand.vmem [shape: f32[16,32], index: 4, kind: output, shape index: {}, may-alias: {3,4}]  }
   0x1   :  { %v162_v0 = vld [vmem:[%s231_s1 + $0x38] sm:$0xff]  ;;  %v161_v1 = vld [vmem:[%s231_s1 + $0x30] sm:$0xff]  ;;  %v160_v2 = vld [vmem:[%s231_s1 + $0x28] sm:$0xff] }
   0x2   :  { %93 = vmatpush.bf16.msra.mxu0 %v162_v0  ;;  %v159_v3 = vld [vmem:[%s231_s1 + $0x20] sm:$0xff]  ;;  %v158_v4 = vld [vmem:[%s231_s1 + $0x18] sm:$0xff]  ;;  %v157_v5 = vld [vmem:[%s231_s1 + $0x10] sm:$0xff] }
   0x3   :  { %v156_v6 = vld [vmem:[%s231_s1 + $0x8] sm:$0xff]  ;;  %v155_v7 = vld [vmem:[%s231_s1] sm:$0xff] }
   0x4   :  { %v154_v8 = vld [vmem:[%s233_s0] sm:$0xff] }
   0x5   :  { %v163_v9 = vld [vmem:[%s232_s2] ss:$0 sm:$0xff] }
   0x6   :  { %94 = vmatpush.bf16.msra.mxu0 %v161_v1  ;;  %v107_v11 = vld [vmem:[%s234_s3] sm:$0xff] }
   0xa   :  { %95 = vmatpush.bf16.msra.mxu0 %v160_v2 }
   0xe   :  { %96 = vmatpush.bf16.msra.mxu0 %v159_v3 }
  0x12   :  { %97 = vmatpush.bf16.msra.mxu0 %v158_v4 }
  0x16   :  { %98 = vmatpush.bf16.msra.mxu0 %v157_v5 }
  0x1a   :  { %99 = vmatpush.bf16.msra.mxu0 %v156_v6 }
  0x1e   :  { %100 = vmatpush.bf16.msra.mxu0 %v155_v7 }
  0x21   :  { %101 = vmatmul.bf16.vlgmr.msra.gmra.mxu0 %v154_v8 }
  0x9e   :  { %v102_v10 = vpop.f32.mrf.mxu0 }
  0x9f   :  { %v103_v12 = vadd.f32 %v163_v9, %v102_v10 }
  0xa1   :  { %v109_v13 = vadd.f32 %v107_v11, %v103_v12 }
  0xa3   :  { %112 = vst.msk [vmem:[%s235_s4] sm:$0xff] %vm111_vm0, %v109_v13 }
  0xa6   :  { %v104_v14 = vpop.f32.mrf.mxu0 }
  0xa7   :  { %v105_v16 = vadd.f32 %v163_v9, %v104_v14 }
  0xaa   :  { %v108_v15 = vld [vmem:[%s234_s3 + $0x8] sm:$0xff] }
  0xab   :  { %v110_v17 = vadd.f32 %v108_v15, %v105_v16 }
  0xad   :  { %113 = vst.msk [vmem:[%s235_s4 + $0x8] sm:$0xff] %vm111_vm0, %v110_v17 }

</bundles_post_ra>
